<compile_context>
chip_gen: v7x
topology: tpu7x:2x2x1
jax: 0.10.0
libtpu: 0.0.40
codegen_flags: <defaults>
</compile_context>

<pallas_src>
import jax
import jax.numpy as jnp
from jax import lax
from jax.experimental import pallas as pl
from jax.experimental.pallas import tpu as pltpu


def _build_kernel(G, C, H, W, KH, KW, O, padding):
    """Returns (kernel_fn, scratch_shapes) for the fused separable conv."""
    p = padding
    Hp, Wp = H + 2 * p, W + 2 * p
    OH, OW = Hp - KH + 1, Wp - KW + 1
    P = OH * OW

    def compute(src_ref, w_ref, b_ref, out_ref):
        # src_ref: (G, C, Hp, Wp); w_ref: (O, KH*KW*C); b_ref: (O, 1)
        w = w_ref[...]                                                # load once
        b = b_ref[...]
        for g in range(G):                                            # small, unrolled
            cols = []
            for kh in range(KH):
                for kw in range(KW):
                    patch = src_ref[g, :, kh:kh + OH, kw:kw + OW]     # (C, OH, OW)
                    cols.append(patch.reshape(C, P))
            rhs = jnp.concatenate(cols, axis=0)                       # (KH*KW*C, P) im2col
            out2d = jnp.dot(w, rhs,
                            preferred_element_type=jnp.float32) + b   # (O, P) on MXU
            out_ref[g] = out2d.astype(out_ref.dtype)                  # lane-dense store

    if p == 0:
        def kernel(x_ref, w_ref, b_ref, out_ref):
            compute(x_ref, w_ref, b_ref, out_ref)
        scratch = []
    else:
        def kernel(x_ref, w_ref, b_ref, out_ref, xp_ref):
            # In-kernel zero padding: zero-fill the padded VMEM scratch and
            # copy the unpadded block into its interior (no wrapper jnp.pad).
            xp_ref[...] = jnp.zeros_like(xp_ref)
            xp_ref[:, :, p:p + H, p:p + W] = x_ref[...]
            compute(xp_ref, w_ref, b_ref, out_ref)
        scratch = [pltpu.VMEM((G, C, Hp, Wp), jnp.float32)]

    return kernel, scratch


def separable_conv2d(x, dw_w, dw_b, pw_w, pw_b, *,
                     stride=1, padding=0, dilation=1, group_size=None):
    """Forward pass of SeparableConv2d (PyTorch semantics).

    x:    (N, C, H, W)    float32  (NCHW)
    dw_w: (C, 1, KH, KW)  depthwise weight (groups=C, depth_multiplier=1)
    dw_b: (C,)
    pw_w: (O, C, 1, 1)    pointwise 1x1 weight
    pw_b: (O,)
    returns: (N, O, OH, OW) float32 (NCHW)
    """
    assert stride == 1 and dilation == 1, "only stride=1, dilation=1 supported"
    assert dw_w.shape[1] == 1, "only depth_multiplier=1 supported"

    N, C, H, W = x.shape
    KH, KW = int(dw_w.shape[2]), int(dw_w.shape[3])
    O = int(pw_w.shape[0])
    p = int(padding)
    Hp, Wp = H + 2 * p, W + 2 * p
    OH, OW = Hp - KH + 1, Wp - KW + 1
    T = KH * KW

    # ---- one-time parameter fold (tiny; would live at model init) ----------
    # out[o, pix] = sum_{kh,kw,c} pw[o,c]*dw[c,kh,kw]*x[c,oh+kh,ow+kw] + b_eff[o]
    x = x.astype(jnp.float32)
    dw = jnp.transpose(dw_w[:, 0].astype(jnp.float32), (1, 2, 0)).reshape(T, C)
    pw = pw_w[:, :, 0, 0].astype(jnp.float32)                         # (O, C)
    w_eff = (pw[:, None, :] * dw[None, :, :]).reshape(O, T * C)       # (O, T*C)
    b_eff = (pw @ dw_b.astype(jnp.float32)
             + pw_b.astype(jnp.float32)).reshape(O, 1)                # (O, 1)

    # ---- group (images per grid step) selection from a VMEM budget ----------
    max_unroll = 8

    def _step_bytes(g):
        in_blk = g * C * H * W * 4
        out_blk = g * O * OH * OW * 4
        scr = g * C * Hp * Wp * 4 if p else 0
        params = (O * T * C + O) * 4
        work = 4 * T * C * OH * OW * 4            # im2col patches + rhs (generous)
        return 2 * (in_blk + out_blk) + scr + params + work

    if group_size is None:
        budget = 20 * 1024 * 1024                  # keep well under the 32 MiB limit
        G = 1
        for g in range(1, min(N, max_unroll) + 1):
            if N % g == 0 and _step_bytes(g) <= budget:
                G = g
    else:
        G = int(group_size)
        assert N % G == 0, "group_size must divide the batch"

    kernel, scratch = _build_kernel(G, C, H, W, KH, KW, O, p)

    # >= default scoped VMEM on every generation; safe headroom on v7x (64 MiB).
    vmem_limit = 32 * 1024 * 1024

    out_flat = pl.pallas_call(
        kernel,
        out_shape=jax.ShapeDtypeStruct((N, O, OH * OW), jnp.float32),
        grid=(N // G,),
        in_specs=[
            pl.BlockSpec((G, C, H, W), lambda n: (n, 0, 0, 0)),
            pl.BlockSpec((O, T * C), lambda n: (0, 0)),
            pl.BlockSpec((O, 1), lambda n: (0, 0)),
        ],
        out_specs=pl.BlockSpec((G, O, OH * OW), lambda n: (n, 0, 0)),
        scratch_shapes=scratch,
        compiler_params=pltpu.CompilerParams(
            dimension_semantics=("parallel",),
            vmem_limit_bytes=vmem_limit,
        ),
    )(x, w_eff, b_eff)

    # contiguous metadata reshape; output is already NCHW-ordered.
    return out_flat.reshape(N, O, OH, OW)


def _reference(x, dw_w, dw_b, pw_w, pw_b, padding=0):
    """Pure-JAX reference matching torch Conv2d semantics (NCHW / OIHW)."""
    C = x.shape[1]
    pad = ((padding, padding), (padding, padding))
    inter = lax.conv_general_dilated(
        x, dw_w, window_strides=(1, 1), padding=pad,
        dimension_numbers=("NCHW", "OIHW", "NCHW"), feature_group_count=C,
    ) + dw_b[None, :, None, None]
    out = lax.conv_general_dilated(
        inter, pw_w, window_strides=(1, 1), padding="VALID",
        dimension_numbers=("NCHW", "OIHW", "NCHW"),
    ) + pw_b[None, :, None, None]
    return out


if __name__ == "__main__":
    key = jax.random.PRNGKey(0)
    k1, k2, k3, k4, k5 = jax.random.split(key, 5)

    # small shapes consistent with the module
    N, C, H, W = 2, 4, 16, 16     # batch=2, in_channels=4, spatial=16x16
    O, K = 8, 3                   # out_channels=8, kernel_size=3, depth_multiplier=1

    x = jax.random.normal(k1, (N, C, H, W), jnp.float32)
    dw_w = jax.random.normal(k2, (C, 1, K, K), jnp.float32) * 0.1   # spatialConv.weight
    dw_b = jax.random.normal(k3, (C,), jnp.float32) * 0.1           # spatialConv.bias
    pw_w = jax.random.normal(k4, (O, C, 1, 1), jnp.float32) * 0.1   # pointConv.weight
    pw_b = jax.random.normal(k5, (O,), jnp.float32) * 0.1           # pointConv.bias

    # padding=0 (module default)
    out = separable_conv2d(x, dw_w, dw_b, pw_w, pw_b)
    out = jax.block_until_ready(out)
    ref = _reference(x, dw_w, dw_b, pw_w, pw_b)
    assert out.shape == (N, O, H - K + 1, W - K + 1), out.shape
    assert jnp.allclose(out, ref, atol=1e-4, rtol=1e-4), "mismatch (padding=0)"

    # padding=1 path (padding folded inside the kernel)
    out_p = separable_conv2d(x, dw_w, dw_b, pw_w, pw_b, padding=1)
    out_p = jax.block_until_ready(out_p)
    ref_p = _reference(x, dw_w, dw_b, pw_w, pw_b, padding=1)
    assert out_p.shape == (N, O, H, W), out_p.shape
    assert jnp.allclose(out_p, ref_p, atol=1e-4, rtol=1e-4), "mismatch (padding=1)"

    print("KERNEL_OK")
</pallas_src>

<mosaic_0001>
module attributes {stable_mosaic.version = 11 : i64} {
  func.func @kernel(%arg0: i32, %arg1: memref<2x4x16x16xf32, #tpu.memory_space<vmem>>, %arg2: memref<8x36xf32, #tpu.memory_space<vmem>>, %arg3: memref<8x1xf32, #tpu.memory_space<vmem>>, %arg4: memref<2x8x196xf32, #tpu.memory_space<vmem>>) attributes {dimension_semantics = [#tpu.dimension_semantics<parallel>], iteration_bounds = array<i64: 1>, scalar_prefetch = 0 : i64, scratch_operands = 0 : i64, tpu.core_type = #tpu.core_type<tc>, window_params = [{transform_indices = @transform_0, window_bounds = array<i64: 2, 4, 16, 16>}, {pipeline_mode = #tpu.pipeline_mode<synchronous>, transform_indices = @transform_1, window_bounds = array<i64: 8, 36>}, {pipeline_mode = #tpu.pipeline_mode<synchronous>, transform_indices = @transform_2, window_bounds = array<i64: 8, 1>}, {transform_indices = @transform_3, window_bounds = array<i64: 2, 8, 196>}]} {
    %c0 = arith.constant 0 : index
    %c0_0 = arith.constant 0 : index
    %0 = vector.load %arg2[%c0, %c0_0] : memref<8x36xf32, #tpu.memory_space<vmem>>, vector<8x36xf32>
    %c0_1 = arith.constant 0 : index
    %c0_2 = arith.constant 0 : index
    %1 = vector.load %arg3[%c0_1, %c0_2] : memref<8x1xf32, #tpu.memory_space<vmem>>, vector<8x1xf32>
    %c0_3 = arith.constant 0 : index
    %c0_4 = arith.constant 0 : index
    %c0_5 = arith.constant 0 : index
    %c0_6 = arith.constant 0 : index
    %2 = vector.load %arg1[%c0_3, %c0_4, %c0_5, %c0_6] : memref<2x4x16x16xf32, #tpu.memory_space<vmem>>, vector<1x4x14x14xf32>
    %3 = vector.shape_cast %2 : vector<1x4x14x14xf32> to vector<4x14x14xf32>
    %4 = vector.shape_cast %3 : vector<4x14x14xf32> to vector<4x196xf32>
    %c0_7 = arith.constant 0 : index
    %c0_8 = arith.constant 0 : index
    %c0_9 = arith.constant 0 : index
    %c1 = arith.constant 1 : index
    %5 = vector.load %arg1[%c0_7, %c0_8, %c0_9, %c1] : memref<2x4x16x16xf32, #tpu.memory_space<vmem>>, vector<1x4x14x14xf32>
    %6 = vector.shape_cast %5 : vector<1x4x14x14xf32> to vector<4x14x14xf32>
    %7 = vector.shape_cast %6 : vector<4x14x14xf32> to vector<4x196xf32>
    %c0_10 = arith.constant 0 : index
    %c0_11 = arith.constant 0 : index
    %c0_12 = arith.constant 0 : index
    %c2 = arith.constant 2 : index
    %8 = vector.load %arg1[%c0_10, %c0_11, %c0_12, %c2] : memref<2x4x16x16xf32, #tpu.memory_space<vmem>>, vector<1x4x14x14xf32>
    %9 = vector.shape_cast %8 : vector<1x4x14x14xf32> to vector<4x14x14xf32>
    %10 = vector.shape_cast %9 : vector<4x14x14xf32> to vector<4x196xf32>
    %c0_13 = arith.constant 0 : index
    %c0_14 = arith.constant 0 : index
    %c1_15 = arith.constant 1 : index
    %c0_16 = arith.constant 0 : index
    %11 = vector.load %arg1[%c0_13, %c0_14, %c1_15, %c0_16] : memref<2x4x16x16xf32, #tpu.memory_space<vmem>>, vector<1x4x14x14xf32>
    %12 = vector.shape_cast %11 : vector<1x4x14x14xf32> to vector<4x14x14xf32>
    %13 = vector.shape_cast %12 : vector<4x14x14xf32> to vector<4x196xf32>
    %c0_17 = arith.constant 0 : index
    %c0_18 = arith.constant 0 : index
    %c1_19 = arith.constant 1 : index
    %c1_20 = arith.constant 1 : index
    %14 = vector.load %arg1[%c0_17, %c0_18, %c1_19, %c1_20] : memref<2x4x16x16xf32, #tpu.memory_space<vmem>>, vector<1x4x14x14xf32>
    %15 = vector.shape_cast %14 : vector<1x4x14x14xf32> to vector<4x14x14xf32>
    %16 = vector.shape_cast %15 : vector<4x14x14xf32> to vector<4x196xf32>
    %c0_21 = arith.constant 0 : index
    %c0_22 = arith.constant 0 : index
    %c1_23 = arith.constant 1 : index
    %c2_24 = arith.constant 2 : index
    %17 = vector.load %arg1[%c0_21, %c0_22, %c1_23, %c2_24] : memref<2x4x16x16xf32, #tpu.memory_space<vmem>>, vector<1x4x14x14xf32>
    %18 = vector.shape_cast %17 : vector<1x4x14x14xf32> to vector<4x14x14xf32>
    %19 = vector.shape_cast %18 : vector<4x14x14xf32> to vector<4x196xf32>
    %c0_25 = arith.constant 0 : index
    %c0_26 = arith.constant 0 : index
    %c2_27 = arith.constant 2 : index
    %c0_28 = arith.constant 0 : index
    %20 = vector.load %arg1[%c0_25, %c0_26, %c2_27, %c0_28] : memref<2x4x16x16xf32, #tpu.memory_space<vmem>>, vector<1x4x14x14xf32>
    %21 = vector.shape_cast %20 : vector<1x4x14x14xf32> to vector<4x14x14xf32>
    %22 = vector.shape_cast %21 : vector<4x14x14xf32> to vector<4x196xf32>
    %c0_29 = arith.constant 0 : index
    %c0_30 = arith.constant 0 : index
    %c2_31 = arith.constant 2 : index
    %c1_32 = arith.constant 1 : index
    %23 = vector.load %arg1[%c0_29, %c0_30, %c2_31, %c1_32] : memref<2x4x16x16xf32, #tpu.memory_space<vmem>>, vector<1x4x14x14xf32>
    %24 = vector.shape_cast %23 : vector<1x4x14x14xf32> to vector<4x14x14xf32>
    %25 = vector.shape_cast %24 : vector<4x14x14xf32> to vector<4x196xf32>
    %c0_33 = arith.constant 0 : index
    %c0_34 = arith.constant 0 : index
    %c2_35 = arith.constant 2 : index
    %c2_36 = arith.constant 2 : index
    %26 = vector.load %arg1[%c0_33, %c0_34, %c2_35, %c2_36] : memref<2x4x16x16xf32, #tpu.memory_space<vmem>>, vector<1x4x14x14xf32>
    %27 = vector.shape_cast %26 : vector<1x4x14x14xf32> to vector<4x14x14xf32>
    %28 = vector.shape_cast %27 : vector<4x14x14xf32> to vector<4x196xf32>
    %29 = tpu.concatenate %4, %7, %10, %13, %16, %19, %22, %25, %28 in 0 : vector<4x196xf32>, vector<4x196xf32>, vector<4x196xf32>, vector<4x196xf32>, vector<4x196xf32>, vector<4x196xf32>, vector<4x196xf32>, vector<4x196xf32>, vector<4x196xf32> -> vector<36x196xf32>
    %cst = arith.constant dense<0.000000e+00> : vector<8x196xf32>
    %30 = tpu.matmul %0, %29, %cst {dimension_numbers = #tpu.dot_dimension_numbers<[1], [0], [0], [1], [0, 0, 1, 1], [], []>} : vector<8x36xf32>, vector<36x196xf32>, vector<8x196xf32> -> vector<8x196xf32>
    %31 = vector.broadcast %1 : vector<8x1xf32> to vector<8x196xf32>
    %32 = arith.addf %30, %31 : vector<8x196xf32>
    %c0_37 = arith.constant 0 : index
    %c0_38 = arith.constant 0 : index
    %c0_39 = arith.constant 0 : index
    %33 = vector.load %arg4[%c0_37, %c0_38, %c0_39] : memref<2x8x196xf32, #tpu.memory_space<vmem>>, vector<1x8x196xf32>
    %34 = vector.shape_cast %33 : vector<1x8x196xf32> to vector<8x196xf32>
    %35 = vector.shape_cast %32 : vector<8x196xf32> to vector<1x8x196xf32>
    tpu.vector_store %arg4[%c0_37, %c0_38, %c0_39], %35 {strides = array<i32>} : memref<2x8x196xf32, #tpu.memory_space<vmem>>, vector<1x8x196xf32>,
    %c1_40 = arith.constant 1 : index
    %c0_41 = arith.constant 0 : index
    %c0_42 = arith.constant 0 : index
    %c0_43 = arith.constant 0 : index
    %36 = vector.load %arg1[%c1_40, %c0_41, %c0_42, %c0_43] : memref<2x4x16x16xf32, #tpu.memory_space<vmem>>, vector<1x4x14x14xf32>
    %37 = vector.shape_cast %36 : vector<1x4x14x14xf32> to vector<4x14x14xf32>
    %38 = vector.shape_cast %37 : vector<4x14x14xf32> to vector<4x196xf32>
    %c1_44 = arith.constant 1 : index
    %c0_45 = arith.constant 0 : index
    %c0_46 = arith.constant 0 : index
    %c1_47 = arith.constant 1 : index
    %39 = vector.load %arg1[%c1_44, %c0_45, %c0_46, %c1_47] : memref<2x4x16x16xf32, #tpu.memory_space<vmem>>, vector<1x4x14x14xf32>
    %40 = vector.shape_cast %39 : vector<1x4x14x14xf32> to vector<4x14x14xf32>
    %41 = vector.shape_cast %40 : vector<4x14x14xf32> to vector<4x196xf32>
    %c1_48 = arith.constant 1 : index
    %c0_49 = arith.constant 0 : index
    %c0_50 = arith.constant 0 : index
    %c2_51 = arith.constant 2 : index
    %42 = vector.load %arg1[%c1_48, %c0_49, %c0_50, %c2_51] : memref<2x4x16x16xf32, #tpu.memory_space<vmem>>, vector<1x4x14x14xf32>
    %43 = vector.shape_cast %42 : vector<1x4x14x14xf32> to vector<4x14x14xf32>
    %44 = vector.shape_cast %43 : vector<4x14x14xf32> to vector<4x196xf32>
    %c1_52 = arith.constant 1 : index
    %c0_53 = arith.constant 0 : index
    %c1_54 = arith.constant 1 : index
    %c0_55 = arith.constant 0 : index
    %45 = vector.load %arg1[%c1_52, %c0_53, %c1_54, %c0_55] : memref<2x4x16x16xf32, #tpu.memory_space<vmem>>, vector<1x4x14x14xf32>
    %46 = vector.shape_cast %45 : vector<1x4x14x14xf32> to vector<4x14x14xf32>
    %47 = vector.shape_cast %46 : vector<4x14x14xf32> to vector<4x196xf32>
    %c1_56 = arith.constant 1 : index
    %c0_57 = arith.constant 0 : index
    %c1_58 = arith.constant 1 : index
    %c1_59 = arith.constant 1 : index
    %48 = vector.load %arg1[%c1_56, %c0_57, %c1_58, %c1_59] : memref<2x4x16x16xf32, #tpu.memory_space<vmem>>, vector<1x4x14x14xf32>
    %49 = vector.shape_cast %48 : vector<1x4x14x14xf32> to vector<4x14x14xf32>
    %50 = vector.shape_cast %49 : vector<4x14x14xf32> to vector<4x196xf32>
    %c1_60 = arith.constant 1 : index
    %c0_61 = arith.constant 0 : index
    %c1_62 = arith.constant 1 : index
    %c2_63 = arith.constant 2 : index
    %51 = vector.load %arg1[%c1_60, %c0_61, %c1_62, %c2_63] : memref<2x4x16x16xf32, #tpu.memory_space<vmem>>, vector<1x4x14x14xf32>
    %52 = vector.shape_cast %51 : vector<1x4x14x14xf32> to vector<4x14x14xf32>
    %53 = vector.shape_cast %52 : vector<4x14x14xf32> to vector<4x196xf32>
    %c1_64 = arith.constant 1 : index
    %c0_65 = arith.constant 0 : index
    %c2_66 = arith.constant 2 : index
    %c0_67 = arith.constant 0 : index
    %54 = vector.load %arg1[%c1_64, %c0_65, %c2_66, %c0_67] : memref<2x4x16x16xf32, #tpu.memory_space<vmem>>, vector<1x4x14x14xf32>
    %55 = vector.shape_cast %54 : vector<1x4x14x14xf32> to vector<4x14x14xf32>
    %56 = vector.shape_cast %55 : vector<4x14x14xf32> to vector<4x196xf32>
    %c1_68 = arith.constant 1 : index
    %c0_69 = arith.constant 0 : index
    %c2_70 = arith.constant 2 : index
    %c1_71 = arith.constant 1 : index
    %57 = vector.load %arg1[%c1_68, %c0_69, %c2_70, %c1_71] : memref<2x4x16x16xf32, #tpu.memory_space<vmem>>, vector<1x4x14x14xf32>
    %58 = vector.shape_cast %57 : vector<1x4x14x14xf32> to vector<4x14x14xf32>
    %59 = vector.shape_cast %58 : vector<4x14x14xf32> to vector<4x196xf32>
    %c1_72 = arith.constant 1 : index
    %c0_73 = arith.constant 0 : index
    %c2_74 = arith.constant 2 : index
    %c2_75 = arith.constant 2 : index
    %60 = vector.load %arg1[%c1_72, %c0_73, %c2_74, %c2_75] : memref<2x4x16x16xf32, #tpu.memory_space<vmem>>, vector<1x4x14x14xf32>
    %61 = vector.shape_cast %60 : vector<1x4x14x14xf32> to vector<4x14x14xf32>
    %62 = vector.shape_cast %61 : vector<4x14x14xf32> to vector<4x196xf32>
    %63 = tpu.concatenate %38, %41, %44, %47, %50, %53, %56, %59, %62 in 0 : vector<4x196xf32>, vector<4x196xf32>, vector<4x196xf32>, vector<4x196xf32>, vector<4x196xf32>, vector<4x196xf32>, vector<4x196xf32>, vector<4x196xf32>, vector<4x196xf32> -> vector<36x196xf32>
    %cst_76 = arith.constant dense<0.000000e+00> : vector<8x196xf32>
    %64 = tpu.matmul %0, %63, %cst_76 {dimension_numbers = #tpu.dot_dimension_numbers<[1], [0], [0], [1], [0, 0, 1, 1], [], []>} : vector<8x36xf32>, vector<36x196xf32>, vector<8x196xf32> -> vector<8x196xf32>
    %65 = vector.broadcast %1 : vector<8x1xf32> to vector<8x196xf32>
    %66 = arith.addf %64, %65 : vector<8x196xf32>
    %c1_77 = arith.constant 1 : index
    %c0_78 = arith.constant 0 : index
    %c0_79 = arith.constant 0 : index
    %67 = vector.load %arg4[%c1_77, %c0_78, %c0_79] : memref<2x8x196xf32, #tpu.memory_space<vmem>>, vector<1x8x196xf32>
    %68 = vector.shape_cast %67 : vector<1x8x196xf32> to vector<8x196xf32>
    %69 = vector.shape_cast %66 : vector<8x196xf32> to vector<1x8x196xf32>
    tpu.vector_store %arg4[%c1_77, %c0_78, %c0_79], %69 {strides = array<i32>} : memref<2x8x196xf32, #tpu.memory_space<vmem>>, vector<1x8x196xf32>,
    return
  }
  func.func @transform_0(%arg0: i32) -> (i32, i32, i32, i32) {
    %c0_i32 = arith.constant 0 : i32
    %c0_i32_0 = arith.constant 0 : i32
    %c0_i32_1 = arith.constant 0 : i32
    %c0_i32_2 = arith.constant 0 : i32
    return %arg0, %c0_i32, %c0_i32_0, %c0_i32_1 : i32, i32, i32, i32
  }
  func.func @transform_1(%arg0: i32) -> (i32, i32) {
    %c0_i32 = arith.constant 0 : i32
    %c0_i32_0 = arith.constant 0 : i32
    %c0_i32_1 = arith.constant 0 : i32
    return %c0_i32, %c0_i32_0 : i32, i32
  }
  func.func @transform_2(%arg0: i32) -> (i32, i32) {
    %c0_i32 = arith.constant 0 : i32
    %c0_i32_0 = arith.constant 0 : i32
    %c0_i32_1 = arith.constant 0 : i32
    return %c0_i32, %c0_i32_0 : i32, i32
  }
  func.func @transform_3(%arg0: i32) -> (i32, i32, i32) {
    %c0_i32 = arith.constant 0 : i32
    %c0_i32_0 = arith.constant 0 : i32
    %c0_i32_1 = arith.constant 0 : i32
    return %arg0, %c0_i32, %c0_i32_0 : i32, i32, i32
  }
}

</mosaic_0001>

<bundles_post_ra>
// kernel: tpu_custom_call.1
= control target key start
LH: loop header
LB: loop body
LE: loop exit
PB: predicated region body
PF: predicated region fallthrough
CT: control target
= control target key end

     0   :  { %8 = vsyncpa [#allocation3], 0  ;;  %s6782_s0 = inlined_call_operand.hbm [shape: f32[2,4,16,16], index: 0, kind: input, shape index: {}]   ;;  %s6783_s1 = inlined_call_operand.vmem [shape: f32[8,36], index: 1, kind: input, shape index: {}]   ;;  %s6784_s2 = inlined_call_operand.vmem [shape: f32[8,1], index: 2, kind: input, shape index: {}]   ;;  %s6785_s3 = inlined_call_operand.hbm [shape: f32[2,8,196], index: 3, kind: output, shape index: {}]  }
   0x1   :  { %9 = vsyncpa [#allocation4], 0  ;;  %s4622_s12 = smov [#allocation2]   ;;  %s4574_s16 = scalar_lea.hbm %s6782_s0, 2048 }
   0x2   :  { %s15_s13 = sshll.u32 %s4622_s12, 4  ;;  %p4575_p0 = scmp.ne.s32.totalorder %s6782_s0, %s4574_s16  ;;  %s16_s13 = int_to_ptr.vmem [resolvable:$true] %s15_s13 }
   0x3   :  { %p4578_p1 = scmp.lt.u32.totalorder %s4574_s16, %s6782_s0 }
   0x5   :  { %p4580_p2 = pnand %p4578_p1, %p4575_p0 }
   0x7   :  { %4583 = shalt.err (!%p4580_p2)
}
   0x8   :  { %s4584_s21 = scalar_lea.vmem %s16_s13, 2048  ;;  %p4589_p4 = scmp.lt.s32.totalorder %s16_s13, %s16_s13 }
   0x9   :  { %p4585_p3 = scmp.ne.s32.totalorder %s16_s13, %s4584_s21  ;;  %p4590_p5 = scmp.lt.s32.totalorder %s4584_s21, %s4584_s21 }
   0xb   :  { %p4591_p6 = por %p4590_p5, %p4589_p4 }
   0xd   :  { %p4592_p7 = pnand %p4591_p6, %p4585_p3 }
   0xf   :  { %4595 = shalt.err (!%p4592_p7)
}
  0x10   :  { %s4623_s22 = smov 128   ;;  %s4624_s23 = smov 8  }
  0x11   :  { %21 = dma.hbm_to_vmem [thread:$0]  %s6782_s0, 2048, %s16_s13, [#allocation3], %s4623_s22, %s4623_s22, %s4624_s23  }
  0x12   :  { %4618 = dma.done.wait [#allocation3], 2048  }
  0x13   :  { %4619 = vsyncadd [#allocation3], 4294965248  ;;  %v44_v0 = vlaneseq  ;;  %v4625_v1 = vmov 1983009808   ;;  %v6786_v4 = vmov 0.0   ;;  %v4682_v9 = vld [vmem:[#allocation2] sm:$0xff] }
  0x14   :  { %v42_v2 = vunpack.c.l.s4 %v4625_v1  ;;  %2076 = vmatprep.mubr.f32.mxu0 %v6786_v4  ;;  %4109 = vmatprep.mubr.f32.mxu1 %v6786_v4  ;;  %v4627_v6 = vmov 1934713408   ;;  %v4684_v10 = vld [vmem:[#allocation2 + $0x10] sm:$0xff]  ;;  %v4686_v11 = vld [vmem:[#allocation2 + $0x20] sm:$0xff]  ;;  %v4694_v16 = vld [vmem:[#allocation2 + $0x8] sm:$0x3f] }
  0x15   :  { %v45_v3 = vshrl.u32 %v44_v0, 7  ;;  %v74_v7 = vunpack.c.l.s4 %v4627_v6  ;;  %v4688_v13 = vld [vmem:[#allocation2 + $0x30] sm:$0xff]  ;;  %v40_v14 = vcombine.high %v4682_v9, %v4686_v11  ;;  %v39_v15 = vcombine.low %v4682_v9, %v4686_v11  ;;  %v4696_v17 = vld [vmem:[#allocation2 + $0x18] sm:$0x3f]  ;;  %v4702_v20 = vld [vmem:[#allocation2 + $0x28] sm:$0x3f] }
  0x16   :  { %v43_v5 = vunpack.c.0.s8 %v42_v2  ;;  %v56_v18 = vcombine.high %v4684_v10, %v4688_v13  ;;  %v55_v19 = vcombine.low %v4684_v10, %v4688_v13  ;;  %v4704_v21 = vld [vmem:[#allocation2 + $0x38] sm:$0x3f]  ;;  %v107_v24 = vcombine.low %v4694_v16, %v4702_v20  ;;  %s4628_s0 = smov 56   ;;  %s4629_s26 = smov 28   ;;  %v4784_v56 = vld [vmem:[#allocation2 + $0x1] sm:$0xff] }
  0x17   :  { %v75_v12 = vunpack.c.0.s8 %v74_v7  ;;  %v123_v25 = vcombine.low %v4696_v17, %v4704_v21  ;;  %v108_v41 = vcombine.high %v4694_v16, %v4702_v20  ;;  %v124_v42 = vcombine.high %v4696_v17, %v4704_v21  ;;  %s4630_s27 = smov 84   ;;  %s4631_s28 = smov 14   ;;  %v4790_v57 = vld [vmem:[#allocation2 + $0x11] sm:$0xff]  ;;  %v4792_v58 = vld [vmem:[#allocation2 + $0x9] sm:$0x3f]  ;;  %v4798_v59 = vld [vmem:[#allocation2 + $0x21] sm:$0xff] }
  0x18   :  { %v4680_v8 = vsub.s32 %v43_v5, %v45_v3  ;;  %s4632_s29 = smov 112   ;;  %s4633_s30 = smov 70   ;;  %v4800_v60 = vld [vmem:[#allocation2 + $0x19] sm:$0x3f]  ;;  %v4806_v61 = vld [vmem:[#allocation2 + $0x31] sm:$0xff]  ;;  %vm218_vm0 = vcmask 113664  }
  0x19   :  { %v4713_v27 = vsub.s32 %v75_v12, %v45_v3  ;;  %s4634_s4 = smov 12   ;;  %s4635_s5 = smov 98   ;;  %v4808_v62 = vld [vmem:[#allocation2 + $0x29] sm:$0x3f]  ;;  %v4814_v63 = vld [vmem:[#allocation2 + $0x39] sm:$0x3f] }
  0x1a   :  { %v54_v22 = vrot.slane %v40_v14, %v4680_v8  ;;  %v47_v23 = vrot.slane %v39_v15, %v4680_v8  ;;  %v70_v26 = vrot.slane %v56_v18, %v4680_v8  ;;  %v63_v28 = vrot.slane %v55_v19, %v4680_v8  ;;  %s4636_s6 = smov 42   ;;  %s4637_s7 = smov 126  }
  0x1b   :  { %v115_v29 = vrot.slane %v107_v24, %v4680_v8  ;;  %v131_v30 = vrot.slane %v123_v25, %v4680_v8  ;;  %v122_v46 = vrot.slane %v108_v41, %v4680_v8  ;;  %v138_v49 = vrot.slane %v124_v42, %v4680_v8  ;;  %s4638_s8 = smov 40   ;;  %s4639_s9 = smov 26  }
  0x1c   :  { %v87_v31 = vcombine.low %v54_v22, %v70_v26  ;;  %v72_v32 = vcombine.high %v47_v23, %v63_v28  ;;  %v71_v33 = vcombine.low %v47_v23, %v63_v28  ;;  %v88_v34 = vcombine.high %v54_v22, %v70_v26  ;;  %s4640_s10 = smov 127   ;;  %s4641_s11 = smov 54  }
  0x1d   :  { %v139_v40 = vcombine.low %v115_v29, %v131_v30  ;;  %v140_v45 = vcombine.high %v115_v29, %v131_v30  ;;  %v155_v52 = vcombine.low %v122_v46, %v138_v49  ;;  %v692_v46 = vcombine.low %v4784_v56, %v4798_v59 }
  0x1e   :  { %v95_v35 = vrot.slane %v87_v31, %v4713_v27  ;;  %v86_v36 = vrot.slane %v72_v32, %v4713_v27  ;;  %v4721_v37 = vrot.slane %v71_v33, %v4713_v27  ;;  %v102_v38 = vrot.slane %v88_v34, %v4713_v27 }
  0x1f   :  { %v147_v44 = vrot.slane %v139_v40, %v4713_v27  ;;  %v154_v47 = vrot.slane %v140_v45, %v4713_v27  ;;  %v162_v53 = vrot.slane %v155_v52, %v4713_v27  ;;  %v693_v52 = vcombine.high %v4784_v56, %v4798_v59 }
  0x20   :  { %179 = vrot.lane.b32.xlu1 %v95_v35, %s4628_s0  ;;  %171 = vrot.lane.b32.xlu0 %v86_v36, %s4629_s26  ;;  %v103_v39 = vcombine.high %v4721_v37, %v6786_v4  ;;  %v105_v43 = vcombine.high %v95_v35, %v6786_v4  ;;  %v106_v48 = vcombine.high %v102_v38, %v6786_v4  ;;  %vm220_vm1 = vcmask 228352  }
  0x21   :  { %v104_v50 = vcombine.high %v86_v36, %v6786_v4  ;;  %v163_v51 = vcombine.high %v147_v44, %v6786_v4  ;;  %v164_v54 = vcombine.high %v154_v47, %v6786_v4  ;;  %v165_v55 = vcombine.high %v162_v53, %v6786_v4 }
  0x22   :  { %vm222_vm2 = vcmask 343040   ;;  %vm224_vm3 = vcmask 457728   ;;  %vm226_vm4 = vcmask 572416   ;;  %vm228_vm5 = vcmask 687104  }
  0x23   :  { %vm230_vm6 = vcmask 801792   ;;  %vm236_vm7 = vcmask 97280   ;;  %vm238_vm8 = vcmask 211968   ;;  %vm232_vm9 = vcmask 916480  }
  0x24   :  { %187 = vrot.lane.b32.xlu1 %v102_v38, %s4630_s27  ;;  %167 = vrot.lane.b32.xlu0 %v103_v39, %s4631_s28  ;;  %vm234_vm10 = vcmask 1031168   ;;  %vm240_vm11 = vcmask 326656   ;;  %vm242_vm12 = vcmask 441344   ;;  %vm1988_vm13 = vcmask 1043456  }
  0x25   :  { %vm2002_vm14 = vcmask 293888   ;;  %vm2084_vm15 = vcmask 556032  }
  0x28   :  { %195 = vrot.lane.b32.xlu1 %v147_v44, %s4632_s29  ;;  %183 = vrot.lane.b32.xlu0 %v105_v43, %s4633_s30 }
  0x2c   :  { %203 = vrot.lane.b32.xlu1 %v154_v47, %s4634_s4  ;;  %191 = vrot.lane.b32.xlu0 %v106_v48, %s4635_s5  ;;  %v708_v47 = vcombine.low %v4790_v57, %v4806_v61 }
  0x30   :  { %175 = vrot.lane.b32.xlu1 %v104_v50, %s4636_s6  ;;  %199 = vrot.lane.b32.xlu0 %v163_v51, %s4637_s7 }
  0x34   :  { %211 = vrot.lane.b32.xlu1 %v162_v53, %s4638_s8  ;;  %207 = vrot.lane.b32.xlu0 %v164_v54, %s4639_s9 }
  0x38   :  { %252 = vrot.lane.b32.xlu1 %v4682_v9, %s4640_s10  ;;  %215 = vrot.lane.b32.xlu0 %v165_v55, %s4641_s11  ;;  %v4884_v55 = vrot.slane %v692_v46, %v4680_v8 }
  0x3c   :  { %256 = vrot.lane.b32.xlu1 %v4684_v10, %s4640_s10  ;;  %254 = vrot.lane.b32.xlu0 %v4694_v16, %s4640_s10 }
  0x40   :  { %260 = vrot.lane.b32.xlu1 %v4686_v11, %s4640_s10  ;;  %258 = vrot.lane.b32.xlu0 %v4696_v17, %s4640_s10 }
  0x44   :  { %264 = vrot.lane.b32.xlu1 %v4688_v13, %s4640_s10  ;;  %262 = vrot.lane.b32.xlu0 %v4702_v20, %s4640_s10 }
  0x48   :  { %470 = vrot.lane.b32.xlu1 %v4694_v16, %s4637_s7  ;;  %266 = vrot.lane.b32.xlu0 %v4704_v21, %s4640_s10 }
  0x4c   :  { %474 = vrot.lane.b32.xlu1 %v4696_v17, %s4637_s7  ;;  %468 = vrot.lane.b32.xlu0 %v4682_v9, %s4637_s7 }
  0x50   :  { %478 = vrot.lane.b32.xlu1 %v4702_v20, %s4637_s7  ;;  %472 = vrot.lane.b32.xlu0 %v4684_v10, %s4637_s7 }
  0x54   :  { %482 = vrot.lane.b32.xlu1 %v4704_v21, %s4637_s7  ;;  %476 = vrot.lane.b32.xlu0 %v4686_v11, %s4637_s7 }
  0x58   :  { %892 = vrot.lane.b32.xlu1 %v4784_v56, %s4640_s10  ;;  %480 = vrot.lane.b32.xlu0 %v4688_v13, %s4637_s7 }
  0x5c   :  { %896 = vrot.lane.b32.xlu1 %v4790_v57, %s4640_s10  ;;  %894 = vrot.lane.b32.xlu0 %v4792_v58, %s4640_s10 }
  0x60   :  { %900 = vrot.lane.b32.xlu1 %v4798_v59, %s4640_s10  ;;  %898 = vrot.lane.b32.xlu0 %v4800_v60, %s4640_s10 }
  0x64   :  { %904 = vrot.lane.b32.xlu1 %v4806_v61, %s4640_s10  ;;  %902 = vrot.lane.b32.xlu0 %v4808_v62, %s4640_s10 }
  0x68   :  { %906 = vrot.lane.b32.xlu0 %v4814_v63, %s4640_s10 }
  0x92   :  { %v4818_v0 = vpop.permute.xlu1 %179  ;;  %v4820_v1 = vpop.permute.xlu0 %171 }
  0x96   :  { %v4822_v2 = vpop.permute.xlu1 %187  ;;  %v4824_v3 = vpop.permute.xlu0 %167 }
  0x9a   :  { %v4826_v5 = vpop.permute.xlu1 %195  ;;  %v4828_v6 = vpop.permute.xlu0 %183 }
  0x9b   :  { %6819 = vst [vmem:[#allocation8_spill] sm:$0xff] %v4826_v5 }
  0x9e   :  { %v4830_v7 = vpop.permute.xlu1 %203  ;;  %v4832_v9 = vpop.permute.xlu0 %191 }
  0xa2   :  { %v4834_v10 = vpop.permute.xlu1 %175  ;;  %v4836_v11 = vpop.permute.xlu0 %199 }
  0xa6   :  { %v4838_v12 = vpop.permute.xlu1 %211  ;;  %v4840_v13 = vpop.permute.xlu0 %207 }
  0xa7   :  { %6820 = vst [vmem:[#allocation9_spill] sm:$0xff] %v4838_v12  ;;  %6821 = vst [vmem:[#allocation10_spill] sm:$0xff] %v4840_v13 }
  0xaa   :  { %v253_v14 = vpop.permute.xlu1 %252  ;;  %v4842_v15 = vpop.permute.xlu0 %215 }
  0xab   :  { %6822 = vst [vmem:[#allocation11_spill] sm:$0xff] %v4842_v15 }
  0xae   :  { %v257_v16 = vpop.permute.xlu1 %256  ;;  %v255_v17 = vpop.permute.xlu0 %254 }
  0xb2   :  { %v261_v18 = vpop.permute.xlu1 %260  ;;  %v259_v19 = vpop.permute.xlu0 %258 }
  0xb3   :  { %v276_v20 = vcombine.low %v253_v14, %v261_v18  ;;  %v277_v23 = vcombine.high %v253_v14, %v261_v18  ;;  %v709_v14 = vcombine.high %v4790_v57, %v4806_v61 }
  0xb5   :  { %v4845_v26 = vrot.slane %v276_v20, %v4680_v8  ;;  %v291_v32 = vrot.slane %v277_v23, %v4680_v8 }
  0xb6   :  { %v265_v21 = vpop.permute.xlu1 %264  ;;  %v263_v22 = vpop.permute.xlu0 %262 }
  0xb7   :  { %v292_v24 = vcombine.low %v257_v16, %v265_v21  ;;  %v293_v25 = vcombine.high %v257_v16, %v265_v21  ;;  %v344_v40 = vcombine.low %v255_v17, %v263_v22  ;;  %v4889_v16 = vrot.slane %v708_v47, %v4680_v8 }
  0xb8   :  { %v345_v18 = vcombine.high %v255_v17, %v263_v22 }
  0xb9   :  { %v4848_v28 = vrot.slane %v292_v24, %v4680_v8  ;;  %v307_v29 = vrot.slane %v293_v25, %v4680_v8  ;;  %v352_v48 = vrot.slane %v344_v40, %v4680_v8  ;;  %v707_v24 = vrot.slane %v693_v52, %v4680_v8 }
  0xba   :  { %v4851_v30 = vpop.permute.xlu1 %470  ;;  %v267_v31 = vpop.permute.xlu0 %266  ;;  %v359_v17 = vrot.slane %v345_v18, %v4680_v8 }
  0xbb   :  { %v309_v33 = vcombine.high %v4845_v26, %v4848_v28  ;;  %v360_v34 = vcombine.low %v259_v19, %v267_v31  ;;  %v324_v36 = vcombine.low %v291_v32, %v307_v29  ;;  %v325_v43 = vcombine.high %v291_v32, %v307_v29 }
  0xbc   :  { %v361_v49 = vcombine.high %v259_v19, %v267_v31  ;;  %v723_v32 = vrot.slane %v709_v14, %v4680_v8 }
  0xbd   :  { %v4857_v35 = vrot.slane %v309_v33, %v4713_v27  ;;  %v368_v41 = vrot.slane %v360_v34, %v4680_v8  ;;  %v4865_v42 = vrot.slane %v324_v36, %v4713_v27  ;;  %v4877_v50 = vrot.slane %v325_v43, %v4713_v27 }
  0xbe   :  { %v4859_v38 = vpop.permute.xlu1 %474  ;;  %v469_v39 = vpop.permute.xlu0 %468  ;;  %v375_v19 = vrot.slane %v361_v49, %v4680_v8  ;;  %v725_v33 = vcombine.high %v4884_v55, %v4889_v16  ;;  %v760_v34 = vcombine.low %v4792_v58, %v4808_v62  ;;  %v776_v36 = vcombine.low %v4800_v60, %v4814_v63 }
  0xbf   :  { %408 = vrot.lane.b32.xlu0 %v4857_v35, %s4629_s26  ;;  %v376_v51 = vcombine.low %v352_v48, %v368_v41  ;;  %v377_v23 = vcombine.high %v352_v48, %v368_v41 }
  0xc0   :  { %v392_v46 = vcombine.low %v359_v17, %v375_v19  ;;  %v4928_v52 = vrot.slane %v725_v33, %v4713_v27  ;;  %v768_v19 = vrot.slane %v760_v34, %v4680_v8  ;;  %v741_v33 = vcombine.high %v707_v24, %v723_v32 }
  0xc1   :  { %v4895_v21 = vrot.slane %v376_v51, %v4713_v27  ;;  %v4917_v43 = vrot.slane %v377_v23, %v4713_v27 }
  0xc2   :  { %v4867_v44 = vpop.permute.xlu1 %478  ;;  %v473_v45 = vpop.permute.xlu0 %472  ;;  %v4935_v23 = vrot.slane %v392_v46, %v4713_v27  ;;  %v761_v46 = vcombine.high %v4792_v58, %v4808_v62  ;;  %v755_v4 = vrot.slane %v741_v33, %v4713_v27 }
  0xc3   :  { %416 = vrot.lane.b32.xlu0 %v4865_v42, %s4628_s0  ;;  %v560_v14 = vcombine.low %v4851_v30, %v4867_v44 }
  0xc4   :  { %v775_v5 = vrot.slane %v761_v46, %v4680_v8 }
  0xc6   :  { %v4881_v53 = vpop.permute.xlu1 %482  ;;  %v477_v54 = vpop.permute.xlu0 %476 }
  0xc7   :  { %424 = vrot.lane.b32.xlu0 %v4877_v50, %s4630_s27  ;;  %v492_v20 = vcombine.low %v469_v39, %v477_v54  ;;  %v493_v25 = vcombine.high %v469_v39, %v477_v54  ;;  %v576_v47 = vcombine.low %v4859_v38, %v4881_v53  ;;  %v740_v54 = vcombine.low %v707_v24, %v723_v32 }
  0xc8   :  { %v568_v24 = vrot.slane %v560_v14, %v4680_v8 }
  0xc9   :  { %v4911_v40 = vrot.slane %v492_v20, %v4680_v8  ;;  %v507_v48 = vrot.slane %v493_v25, %v4680_v8  ;;  %v784_v20 = vrot.slane %v776_v36, %v4680_v8  ;;  %v4949_v36 = vrot.slane %v740_v54, %v4713_v27 }
  0xca   :  { %v4898_v29 = vpop.permute.xlu1 %892  ;;  %v481_v31 = vpop.permute.xlu0 %480 }
  0xcb   :  { %v508_v22 = vcombine.low %v473_v45, %v481_v31  ;;  %432 = vrot.lane.b32.xlu0 %v4895_v21, %s4632_s29  ;;  %v509_v39 = vcombine.high %v473_v45, %v481_v31  ;;  %v584_v31 = vrot.slane %v576_v47, %v4680_v8  ;;  %v777_v47 = vcombine.high %v4800_v60, %v4814_v63 }
  0xcd   :  { %v4914_v41 = vrot.slane %v508_v22, %v4680_v8  ;;  %v523_v49 = vrot.slane %v509_v39, %v4680_v8 }
  0xce   :  { %v897_v51 = vpop.permute.xlu1 %896 }
  0xcf   :  { %v525_v45 = vcombine.high %v4911_v40, %v4914_v41  ;;  %440 = vrot.lane.b32.xlu0 %v4917_v43, %s4634_s4  ;;  %v540_v18 = vcombine.low %v507_v48, %v523_v49  ;;  %v541_v17 = vcombine.high %v507_v48, %v523_v49  ;;  %v792_v48 = vcombine.low %v768_v19, %v784_v20 }
  0xd0   :  { %v577_v49 = vcombine.high %v4859_v38, %v4881_v53  ;;  %v561_v38 = vcombine.high %v4851_v30, %v4867_v44  ;;  %v724_v53 = vcombine.low %v4884_v55, %v4889_v16  ;;  %v593_v30 = vcombine.high %v568_v24, %v584_v31 }
  0xd1   :  { %v4938_v25 = vrot.slane %v525_v45, %v4713_v27  ;;  %v4946_v34 = vrot.slane %v540_v18, %v4713_v27  ;;  %v592_v45 = vcombine.low %v568_v24, %v584_v31  ;;  %v555_v54 = vrot.slane %v541_v17, %v4713_v27 }
  0xd2   :  { %v901_v22 = vpop.permute.xlu1 %900  ;;  %v524_v17 = vcombine.low %v4911_v40, %v4914_v41  ;;  %v591_v33 = vrot.slane %v577_v49, %v4680_v8  ;;  %v800_v44 = vrot.slane %v792_v48, %v4713_v27  ;;  %v793_v55 = vcombine.high %v768_v19, %v784_v20 }
  0xd3   :  { %448 = vrot.lane.b32.xlu0 %v4935_v23, %s4638_s8  ;;  %v4182_v39 = vpack.i.bf16 %v4928_v52, %v4938_v25  ;;  %v916_v32 = vcombine.low %v4898_v29, %v901_v22  ;;  %v917_v15 = vcombine.high %v4898_v29, %v901_v22  ;;  %v4187_v14 = vpack.i.bf16 %v4949_v36, %v4946_v34 }
  0xd4   :  { %v4192_v40 = vpack.i.bf16 %v755_v4, %v555_v54  ;;  %v575_v46 = vrot.slane %v561_v38, %v4680_v8  ;;  %v5002_v19 = vrot.slane %v524_v17, %v4713_v27  ;;  %v807_v48 = vrot.slane %v793_v55, %v4713_v27  ;;  %v895_v17 = vpop.permute.xlu0 %894 }
  0xd5   :  { %4183 = vrot.lane.b32.xlu1 %v4182_v39, %s4629_s26  ;;  %v791_v39 = vrot.slane %v777_v47, %v4680_v8  ;;  %v4974_v29 = vrot.slane %v916_v32, %v4680_v8  ;;  %v4986_v16 = vrot.slane %v917_v15, %v4680_v8  ;;  %v607_v32 = vrot.slane %v593_v30, %v4713_v27 }
  0xd6   :  { %v905_v18 = vpop.permute.xlu1 %904  ;;  %v608_v47 = vcombine.low %v575_v46, %v591_v33 }
  0xd7   :  { %v932_v12 = vcombine.low %v897_v51, %v905_v18  ;;  %v933_v13 = vcombine.high %v897_v51, %v905_v18  ;;  %v808_v20 = vcombine.low %v775_v5, %v791_v39  ;;  %v4202_v39 = vpack.i.bf16 %v807_v48, %v607_v32 }
  0xd8   :  { %v615_v38 = vrot.slane %v608_v47, %v4713_v27 }
  0xd9   :  { %v4977_v51 = vrot.slane %v932_v12, %v4680_v8  ;;  %v4980_v22 = vrot.slane %v933_v13, %v4680_v8  ;;  %4188 = vrot.lane.b32.xlu1 %v4187_v14, %s4628_s0  ;;  %v600_v12 = vrot.slane %v592_v45, %v4713_v27  ;;  %v4992_v13 = vrot.slane %v724_v53, %v4713_v27 }
  0xda   :  { %v6823_v45 = vmov 0.0   ;;  %v308_v14 = vcombine.low %v4845_v26, %v4848_v28  ;;  %v815_v53 = vrot.slane %v808_v20, %v4713_v27 }
  0xdb   :  { %v949_v41 = vcombine.high %v4974_v29, %v4977_v51  ;;  %v964_v15 = vcombine.low %v4986_v16, %v4980_v22  ;;  %v4197_v24 = vpack.i.bf16 %v800_v44, %v600_v12  ;;  %v556_v18 = vcombine.high %v5002_v19, %v6823_v45 }
  0xdc   :  { %v756_v5 = vcombine.high %v4992_v13, %v6823_v45  ;;  %v557_v30 = vcombine.high %v4938_v25, %v6823_v45  ;;  %v757_v55 = vcombine.high %v4928_v52, %v6823_v45  ;;  %v4207_v26 = vpack.i.bf16 %v815_v53, %v615_v38 }
  0xdd   :  { %4193 = vrot.lane.b32.xlu1 %v4192_v40, %s4630_s27  ;;  %v4997_v31 = vrot.slane %v949_v41, %v4713_v27  ;;  %v5010_v49 = vrot.slane %v964_v15, %v4713_v27  ;;  %v5029_v28 = vrot.slane %v308_v14, %v4713_v27  ;;  %v558_v41 = vcombine.high %v4946_v34, %v6823_v45  ;;  %v899_v15 = vpop.permute.xlu0 %898 }
  0xde   :  { %v4212_v33 = vpack.i.bf16 %v756_v5, %v556_v18  ;;  %v4217_v40 = vpack.i.bf16 %v757_v55, %v557_v30  ;;  %v758_v46 = vcombine.high %v4949_v36, %v6823_v45  ;;  %v559_v20 = vcombine.high %v555_v54, %v6823_v45 }
  0xdf   :  { %1048 = vrot.lane.b32.xlu0 %v4997_v31, %s4629_s26  ;;  %v340_v52 = vcombine.high %v5029_v28, %v6823_v45  ;;  %v759_v47 = vcombine.high %v755_v4, %v6823_v45  ;;  %v341_v34 = vcombine.high %v4857_v35, %v6823_v45  ;;  %v616_v18 = vcombine.high %v600_v12, %v6823_v45 }
  0xe0   :  { %v4222_v25 = vpack.i.bf16 %v758_v46, %v558_v41  ;;  %v816_v5 = vcombine.high %v800_v44, %v6823_v45  ;;  %v342_v54 = vcombine.high %v4865_v42, %v6823_v45  ;;  %v617_v14 = vcombine.high %v607_v32, %v6823_v45 }
  0xe1   :  { %4198 = vrot.lane.b32.xlu1 %v4197_v24, %s4632_s29  ;;  %v903_v24 = vpop.permute.xlu0 %902  ;;  %v4227_v36 = vpack.i.bf16 %v759_v47, %v559_v20  ;;  %v817_v35 = vcombine.high %v807_v48, %v6823_v45  ;;  %v343_v12 = vcombine.high %v4877_v50, %v6823_v45  ;;  %v818_v44 = vcombine.high %v815_v53, %v6823_v45 }
  0xe2   :  { %v4232_v4 = vpack.i.bf16 %v816_v5, %v616_v18  ;;  %v618_v55 = vcombine.high %v615_v38, %v6823_v45  ;;  %v400_v32 = vcombine.high %v4895_v21, %v6823_v45  ;;  %v965_v53 = vcombine.high %v4986_v16, %v4980_v22 }
  0xe3   :  { %1056 = vrot.lane.b32.xlu0 %v5010_v49, %s4628_s0  ;;  %v4237_v42 = vpack.i.bf16 %v817_v35, %v617_v14  ;;  %v401_v38 = vcombine.high %v4917_v43, %v6823_v45  ;;  %v985_v41 = vcombine.high %v895_v17, %v903_v24  ;;  %v402_v22 = vcombine.high %v4935_v23, %v6823_v45 }
  0xe4   :  { %v4242_v50 = vpack.i.bf16 %v818_v44, %v618_v55  ;;  %v979_v46 = vrot.slane %v965_v53, %v4713_v27  ;;  %v981_v20 = vcombine.high %v4997_v31, %v6823_v45  ;;  %v219_v44 = vsel %vm218_vm0, %v4721_v37, %v4824_v3 }
  0xe5   :  { %4203 = vrot.lane.b32.xlu1 %v4202_v39, %s4634_s4  ;;  %v907_v39 = vpop.permute.xlu0 %906  ;;  %v221_v55 = vsel %vm220_vm1, %v219_v44, %v4820_v1 }
  0xe6   :  { %v1000_v30 = vcombine.low %v899_v15, %v907_v39  ;;  %v1001_v21 = vcombine.high %v899_v15, %v907_v39 }
  0xe7   :  { %4213 = vrot.lane.b32.xlu0 %v4212_v33, %s4631_s28  ;;  %v984_v33 = vcombine.low %v895_v17, %v903_v24  ;;  %v983_v24 = vcombine.high %v979_v46, %v6823_v45 }
  0xe9   :  { %4208 = vrot.lane.b32.xlu1 %v4207_v26, %s4638_s8  ;;  %v992_v48 = vrot.slane %v984_v33, %v4680_v8  ;;  %v1008_v26 = vrot.slane %v1000_v30, %v4680_v8 }
  0xeb   :  { %4218 = vrot.lane.b32.xlu0 %v4217_v40, %s4636_s6  ;;  %v948_v40 = vcombine.low %v4974_v29, %v4977_v51  ;;  %v999_v29 = vrot.slane %v985_v41, %v4680_v8  ;;  %v1015_v51 = vrot.slane %v1001_v21, %v4680_v8  ;;  %v1017_v17 = vcombine.high %v992_v48, %v1008_v26 }
  0xed   :  { %404 = vrot.lane.b32.xlu1 %v340_v52, %s4631_s28  ;;  %v1016_v52 = vcombine.low %v992_v48, %v1008_v26  ;;  %v5079_v16 = vrot.slane %v948_v40, %v4713_v27  ;;  %v1031_v23 = vrot.slane %v1017_v17, %v4713_v27 }
  0xef   :  { %4223 = vrot.lane.b32.xlu0 %v4222_v25, %s4633_s30  ;;  %v1024_v43 = vrot.slane %v1016_v52, %v4713_v27  ;;  %v980_v15 = vcombine.high %v5079_v16, %v6823_v45  ;;  %v1032_v25 = vcombine.low %v999_v29, %v1015_v51 }
  0xf1   :  { %412 = vrot.lane.b32.xlu1 %v341_v34, %s4636_s6  ;;  %v1039_v47 = vrot.slane %v1032_v25, %v4713_v27  ;;  %v982_v34 = vcombine.high %v5010_v49, %v6823_v45  ;;  %v1040_v31 = vcombine.high %v1024_v43, %v6823_v45  ;;  %v1041_v49 = vcombine.high %v1031_v23, %v6823_v45 }
  0xf2   :  { %v237_v25 = vsel %vm236_vm7, %v4836_v11, %v4830_v7 }
  0xf3   :  { %4228 = vrot.lane.b32.xlu0 %v4227_v36, %s4635_s5 }
  0xf5   :  { %420 = vrot.lane.b32.xlu1 %v342_v54, %s4633_s30 }
  0xf7   :  { %4233 = vrot.lane.b32.xlu0 %v4232_v4, %s4637_s7 }
  0xf9   :  { %428 = vrot.lane.b32.xlu1 %v343_v12, %s4635_s5 }
  0xfb   :  { %4238 = vrot.lane.b32.xlu0 %v4237_v42, %s4639_s9 }
  0xfd   :  { %436 = vrot.lane.b32.xlu1 %v400_v32, %s4637_s7  ;;  %v223_v32 = vsel %vm222_vm2, %v221_v55, %v4834_v10 }
  0xfe   :  { %v225_v53 = vsel %vm224_vm3, %v223_v32, %v4818_v0 }
  0xff   :  { %4243 = vrot.lane.b32.xlu0 %v4242_v50, %s4641_s11 }
 0x101   :  { %444 = vrot.lane.b32.xlu1 %v401_v38, %s4639_s9 }
 0x103   :  { %1064 = vrot.lane.b32.xlu0 %v979_v46, %s4630_s27 }
 0x105   :  { %452 = vrot.lane.b32.xlu1 %v402_v22, %s4641_s11 }
 0x107   :  { %1072 = vrot.lane.b32.xlu0 %v1024_v43, %s4632_s29 }
 0x109   :  { %1044 = vrot.lane.b32.xlu1 %v980_v15, %s4631_s28 }
 0x10b   :  { %1080 = vrot.lane.b32.xlu0 %v1031_v23, %s4634_s4 }
 0x10d   :  { %1052 = vrot.lane.b32.xlu1 %v981_v20, %s4636_s6 }
 0x10f   :  { %1088 = vrot.lane.b32.xlu0 %v1039_v47, %s4638_s8 }
 0x111   :  { %1060 = vrot.lane.b32.xlu1 %v982_v34, %s4633_s30 }
 0x113   :  { %1108 = vrot.lane.b32.xlu0 %v4784_v56, %s4637_s7  ;;  %v1042_v56 = vcombine.high %v1039_v47, %v6823_v45 }
 0x115   :  { %1068 = vrot.lane.b32.xlu1 %v983_v24, %s4635_s5 }
 0x117   :  { %1112 = vrot.lane.b32.xlu0 %v4790_v57, %s4637_s7 }
 0x119   :  { %1076 = vrot.lane.b32.xlu1 %v1040_v31, %s4637_s7 }
 0x11b   :  { %1116 = vrot.lane.b32.xlu0 %v4798_v59, %s4637_s7 }
 0x11d   :  { %1084 = vrot.lane.b32.xlu1 %v1041_v49, %s4639_s9 }
 0x11f   :  { %1120 = vrot.lane.b32.xlu0 %v4806_v61, %s4637_s7 }
 0x121   :  { %1092 = vrot.lane.b32.xlu1 %v1042_v56, %s4641_s11 }
 0x125   :  { %1110 = vrot.lane.b32.xlu1 %v4792_v58, %s4637_s7 }
 0x129   :  { %1114 = vrot.lane.b32.xlu1 %v4800_v60, %s4637_s7 }
 0x12d   :  { %1118 = vrot.lane.b32.xlu1 %v4808_v62, %s4637_s7 }
 0x131   :  { %1122 = vrot.lane.b32.xlu1 %v4814_v63, %s4637_s7  ;;  %v409_v57 = vpop.permute.xlu0 %408 }
 0x135   :  { %v417_v59 = vpop.permute.xlu0 %416 }
 0x139   :  { %v5123_v36 = vpop.permute.xlu0 %424 }
 0x13d   :  { %v5125_v61 = vpop.permute.xlu0 %432 }
 0x141   :  { %v5127_v18 = vpop.permute.xlu0 %440 }
 0x145   :  { %v5131_v58 = vpop.permute.xlu0 %448 }
 0x147   :  { %v4184_v5 = vpop.permute.xlu1 %4183 }
 0x148   :  { %v4186_v40 = vunpack.i.h.bf16 %v4184_v5  ;;  %v4185_v43 = vunpack.i.l.bf16 %v4184_v5 }
 0x14b   :  { %v5129_v54 = vpop.permute.xlu1 %4188 }
 0x14c   :  { %v4191_v52 = vunpack.i.h.bf16 %v5129_v54  ;;  %v4190_v5 = vunpack.i.l.bf16 %v5129_v54 }
 0x14f   :  { %v5133_v60 = vpop.permute.xlu1 %4193 }
 0x150   :  { %v4196_v20 = vunpack.i.h.bf16 %v5133_v60 }
 0x151   :  { %v5135_v4 = vpop.permute.xlu0 %1048 }
 0x153   :  { %v5137_v62 = vpop.permute.xlu1 %4198 }
 0x155   :  { %v5139_v63 = vpop.permute.xlu0 %1056 }
 0x157   :  { %v5141_v14 = vpop.permute.xlu1 %4203 }
 0x158   :  { %v4206_v47 = vunpack.i.h.bf16 %v5141_v14 }
 0x159   :  { %v4214_v35 = vpop.permute.xlu0 %4213 }
 0x15a   :  { %v4216_v30 = vunpack.i.h.bf16 %v4214_v35  ;;  %v4215_v1 = vunpack.i.l.bf16 %v4214_v35 }
 0x15b   :  { %v5143_v39 = vpop.permute.xlu1 %4208 }
 0x15c   :  { %v871_v37 = vsel %vm218_vm0, %v4992_v13, %v4216_v30  ;;  %v227_v13 = vsel %vm226_vm4, %v225_v53, %v4828_v6  ;;  %v671_v22 = vsel %vm218_vm0, %v5002_v19, %v4215_v1  ;;  %v4205_v30 = vunpack.i.l.bf16 %v5141_v14 }
 0x15d   :  { %v4219_v12 = vpop.permute.xlu0 %4218  ;;  %v229_v23 = vsel %vm228_vm5, %v227_v13, %v4822_v2  ;;  %v672_v34 = vsel %vm220_vm1, %v671_v22, %v4185_v43 }
 0x15e   :  { %v4221_v3 = vunpack.i.h.bf16 %v4219_v12  ;;  %v4220_v29 = vunpack.i.l.bf16 %v4219_v12 }
 0x15f   :  { %v405_v33 = vpop.permute.xlu1 %404 }
 0x160   :  { %v455_v48 = vsel %vm218_vm0, %v5029_v28, %v405_v33  ;;  %v872_v28 = vsel %vm220_vm1, %v871_v37, %v4186_v40  ;;  %v673_v56 = vsel %vm222_vm2, %v672_v34, %v4220_v29  ;;  %v4201_v33 = vunpack.i.h.bf16 %v5137_v62 }
 0x161   :  { %v5148_v42 = vpop.permute.xlu0 %4223  ;;  %v456_v38 = vsel %vm220_vm1, %v455_v48, %v409_v57  ;;  %v873_v21 = vsel %vm222_vm2, %v872_v28, %v4221_v3  ;;  %v674_v32 = vsel %vm224_vm3, %v673_v56, %v4190_v5 }
 0x162   :  { %v4226_v0 = vunpack.i.h.bf16 %v5148_v42  ;;  %v874_v19 = vsel %vm224_vm3, %v873_v21, %v4191_v52  ;;  %v4225_v2 = vunpack.i.l.bf16 %v5148_v42  ;;  %v6824_v21 = vld [vmem:[#allocation8_spill] sm:$0xff] }
 0x163   :  { %v413_v26 = vpop.permute.xlu1 %412 }
 0x164   :  { %v457_v10 = vsel %vm222_vm2, %v456_v38, %v413_v26  ;;  %v875_v24 = vsel %vm226_vm4, %v874_v19, %v4226_v0  ;;  %v675_v26 = vsel %vm226_vm4, %v674_v32, %v4225_v2  ;;  %v6826_v19 = vld [vmem:[#allocation9_spill] sm:$0xff]  ;;  %v6827_v2 = vld [vmem:[#allocation11_spill] sm:$0xff] }
 0x165   :  { %v5158_v50 = vpop.permute.xlu0 %4228  ;;  %v458_v51 = vsel %vm224_vm3, %v457_v10, %v417_v59  ;;  %v231_v59 = vsel %vm230_vm6, %v229_v23, %v4832_v9  ;;  %v876_v42 = vsel %vm228_vm5, %v875_v24, %v4196_v20  ;;  %v5259_v32 = vld [vmem:[#allocation2 + $0x2] sm:$0xff] }
 0x166   :  { %v4231_v31 = vunpack.i.h.bf16 %v5158_v50  ;;  %v4230_v53 = vunpack.i.l.bf16 %v5158_v50  ;;  %v233_v0 = vsel %vm232_vm9, %v231_v59, %v6824_v21  ;;  %v6825_v50 = vld [vmem:[#allocation10_spill] sm:$0xff] }
 0x167   :  { %v421_v41 = vpop.permute.xlu1 %420 }
 0x168   :  { %v459_v6 = vsel %vm226_vm4, %v458_v51, %v421_v41  ;;  %v877_v9 = vsel %vm230_vm6, %v876_v42, %v4231_v31  ;;  %v4195_v41 = vunpack.i.l.bf16 %v5133_v60  ;;  %v235_v31 = vsel %vm234_vm10, %v233_v0, %v4836_v11 }
 0x169   :  { %v5169_v46 = vpop.permute.xlu0 %4233  ;;  %v460_v7 = vsel %vm228_vm5, %v459_v6, %v5123_v36  ;;  %v4211_v36 = vunpack.i.h.bf16 %v5143_v39  ;;  %v4210_v6 = vunpack.i.l.bf16 %v5143_v39 }
 0x16a   :  { %v4236_v17 = vunpack.i.h.bf16 %v5169_v46  ;;  %v4235_v54 = vunpack.i.l.bf16 %v5169_v46  ;;  %v239_v46 = vsel %vm238_vm8, %v237_v25, %v6825_v50  ;;  %v676_v60 = vsel %vm228_vm5, %v675_v26, %v4195_v41 }
 0x16b   :  { %v429_v15 = vpop.permute.xlu1 %428 }
 0x16c   :  { %v880_v35 = vsel %vm236_vm7, %v4236_v17, %v4206_v47  ;;  %v461_v12 = vsel %vm230_vm6, %v460_v7, %v429_v15  ;;  %v680_v52 = vsel %vm236_vm7, %v4235_v54, %v4205_v30  ;;  %v677_v15 = vsel %vm230_vm6, %v676_v60, %v4230_v53 }
 0x16d   :  { %v4239_v49 = vpop.permute.xlu0 %4238  ;;  %v462_v37 = vsel %vm232_vm9, %v461_v12, %v5125_v61  ;;  %v878_v61 = vsel %vm232_vm9, %v877_v9, %v4201_v33  ;;  %v241_v47 = vsel %vm240_vm11, %v239_v46, %v6826_v19  ;;  %v5261_v9 = vld [vmem:[#allocation2 + $0x12] sm:$0xff]  ;;  %v5294_v19 = vld [vmem:[#allocation2 + $0xa] sm:$0x3f] }
 0x16e   :  { %v4241_v57 = vunpack.i.h.bf16 %v4239_v49  ;;  %v4240_v3 = vunpack.i.l.bf16 %v4239_v49  ;;  %v879_v22 = vsel %vm234_vm10, %v878_v61, %v4236_v17  ;;  %v4200_v17 = vunpack.i.l.bf16 %v5137_v62 }
 0x16f   :  { %v437_v44 = vpop.permute.xlu1 %436  ;;  %v1972_v24 = vrot.slane %v879_v22, 4 }
 0x170   :  { %v881_v55 = vsel %vm238_vm8, %v880_v35, %v4241_v57  ;;  %v463_v40 = vsel %vm234_vm10, %v462_v37, %v437_v44  ;;  %v464_v1 = vsel %vm236_vm7, %v437_v44, %v5127_v18  ;;  %v681_v43 = vsel %vm238_vm8, %v680_v52, %v4240_v3 }
 0x171   :  { %v4244_v48 = vpop.permute.xlu0 %4243  ;;  %v882_v10 = vsel %vm240_vm11, %v881_v55, %v4211_v36  ;;  %v1966_v29 = vrot.slane %v463_v40, 4  ;;  %v682_v56 = vsel %vm240_vm11, %v681_v43, %v4210_v6  ;;  %v678_v57 = vsel %vm232_vm9, %v677_v15, %v4200_v17 }
 0x172   :  { %v4246_v14 = vunpack.i.h.bf16 %v4244_v48  ;;  %v4245_v51 = vunpack.i.l.bf16 %v4244_v48  ;;  %v679_v35 = vsel %vm234_vm10, %v678_v57, %v4235_v54  ;;  %v5263_v48 = vld [vmem:[#allocation2 + $0x22] sm:$0xff]  ;;  %v5265_v54 = vld [vmem:[#allocation2 + $0x32] sm:$0xff] }
 0x173   :  { %v445_v38 = vpop.permute.xlu1 %444  ;;  %v1989_v62 = vsel %vm1988_vm13, %v235_v31, %v1966_v29  ;;  %v1991_v44 = vsel %vm1988_vm13, %v679_v35, %v1972_v24  ;;  %v1332_v3 = vcombine.low %v5259_v32, %v5263_v48  ;;  %v1333_v41 = vcombine.high %v5259_v32, %v5263_v48  ;;  %v5297_v31 = vld [vmem:[#allocation2 + $0x1a] sm:$0x3f] }
 0x174   :  { %v465_v28 = vsel %vm238_vm8, %v464_v1, %v445_v38  ;;  %v883_v13 = vsel %vm242_vm12, %v882_v10, %v4246_v14  ;;  %v683_v7 = vsel %vm242_vm12, %v682_v56, %v4245_v51  ;;  %v4144_v30 = vpack.c.bf16 %v1991_v44, %v1989_v62  ;;  %v5301_v56 = vld [vmem:[#allocation2 + $0x3a] sm:$0x3f] }
 0x175   :  { %v5222_v18 = vpop.permute.xlu0 %1064  ;;  %v466_v25 = vsel %vm240_vm11, %v465_v28, %v5131_v58  ;;  %v1973_v20 = vrot.slane %v883_v13, 4  ;;  %v243_v58 = vsel %vm242_vm12, %v241_v47, %v6827_v2  ;;  %v1348_v14 = vcombine.low %v5261_v9, %v5265_v54 }
 0x176   :  { %v1340_v1 = vrot.slane %v1332_v3, %v4680_v8  ;;  %v1349_v28 = vcombine.high %v5261_v9, %v5265_v54  ;;  %v1347_v46 = vrot.slane %v1333_v41, %v4680_v8  ;;  %v1416_v35 = vcombine.low %v5297_v31, %v5301_v56 }
 0x177   :  { %v453_v23 = vpop.permute.xlu1 %452  ;;  %v1992_v11 = vsel %vm1988_vm13, %v683_v7, %v1973_v20  ;;  %v1356_v38 = vrot.slane %v1348_v14, %v4680_v8 }
 0x178   :  { %v467_v34 = vsel %vm242_vm12, %v466_v25, %v453_v23  ;;  %v1363_v52 = vrot.slane %v1349_v28, %v4680_v8 }
 0x179   :  { %v1967_v49 = vrot.slane %v467_v34, 4  ;;  %v5237_v39 = vpop.permute.xlu0 %1072  ;;  %v1364_v61 = vcombine.low %v1340_v1, %v1356_v38  ;;  %v1365_v29 = vcombine.high %v1340_v1, %v1356_v38 }
 0x17a   :  { %v1380_v20 = vcombine.low %v1347_v46, %v1363_v52 }
 0x17b   :  { %v5245_v59 = vpop.permute.xlu1 %1044  ;;  %v1990_v5 = vsel %vm1988_vm13, %v243_v58, %v1967_v49  ;;  %v5288_v43 = vrot.slane %v1364_v61, %v4713_v27  ;;  %v1379_v24 = vrot.slane %v1365_v29, %v4713_v27  ;;  %v5299_v49 = vld [vmem:[#allocation2 + $0x2a] sm:$0x3f]  ;;  %v1424_v61 = vrot.slane %v1416_v35, %v4680_v8 }
 0x17c   :  { %v4142_v12 = vpack.c.bf16 %v1992_v11, %v1990_v5  ;;  %v1388_v62 = vrot.slane %v1380_v20, %v4713_v27  ;;  %v1381_v5 = vcombine.high %v1347_v46, %v1363_v52  ;;  %v1400_v11 = vcombine.low %v5294_v19, %v5299_v49 }
 0x17d   :  { %v5251_v33 = vpop.permute.xlu0 %1080  ;;  %v1396_v57 = vcombine.high %v5288_v43, %v6823_v45  ;;  %v1397_v1 = vcombine.high %v1379_v24, %v6823_v45  ;;  %v1401_v52 = vcombine.high %v5294_v19, %v5299_v49 }
 0x17e   :  { %4143 = vmatprep.subr.bf16.mxu0 %v4142_v12  ;;  %v1395_v38 = vrot.slane %v1381_v5, %v4713_v27  ;;  %v1408_v28 = vrot.slane %v1400_v11, %v4680_v8  ;;  %v1398_v46 = vcombine.high %v1388_v62, %v6823_v45 }
 0x17f   :  { %v5253_v42 = vpop.permute.xlu1 %1052  ;;  %4145 = vmatpush1.bf16.msra.mxu0 %v4144_v30 }
 0x181   :  { %v5255_v55 = vpop.permute.xlu0 %1088 }
 0x183   :  { %v5257_v36 = vpop.permute.xlu1 %1060 }
 0x185   :  { %v1109_v26 = vpop.permute.xlu0 %1108 }
 0x187   :  { %v5267_v37 = vpop.permute.xlu1 %1068 }
 0x189   :  { %v1113_v53 = vpop.permute.xlu0 %1112 }
 0x18b   :  { %v5273_v40 = vpop.permute.xlu1 %1076 }
 0x18d   :  { %v1117_v10 = vpop.permute.xlu0 %1116 }
 0x18e   :  { %v1132_v21 = vcombine.low %v1109_v26, %v1117_v10  ;;  %v1133_v0 = vcombine.high %v1109_v26, %v1117_v10 }
 0x18f   :  { %v5281_v13 = vpop.permute.xlu1 %1084 }
 0x190   :  { %v1140_v6 = vrot.slane %v1132_v21, %v4680_v8  ;;  %v1147_v15 = vrot.slane %v1133_v0, %v4680_v8 }
 0x191   :  { %v1121_v50 = vpop.permute.xlu0 %1120 }
 0x192   :  { %v1148_v22 = vcombine.low %v1113_v53, %v1121_v50  ;;  %v1149_v60 = vcombine.high %v1113_v53, %v1121_v50 }
 0x193   :  { %v5285_v51 = vpop.permute.xlu1 %1092 }
 0x194   :  { %v1156_v23 = vrot.slane %v1148_v22, %v4680_v8  ;;  %v1163_v25 = vrot.slane %v1149_v60, %v4680_v8  ;;  %v1417_v22 = vcombine.high %v5297_v31, %v5301_v56 }
 0x196   :  { %v1164_v47 = vcombine.low %v1140_v6, %v1156_v23  ;;  %v1165_v17 = vcombine.high %v1140_v6, %v1156_v23  ;;  %v1180_v34 = vcombine.low %v1147_v15, %v1163_v25  ;;  %v1181_v12 = vcombine.high %v1147_v15, %v1163_v25 }
 0x197   :  { %v1111_v2 = vpop.permute.xlu1 %1110  ;;  %v1432_v6 = vcombine.low %v1408_v28, %v1424_v61  ;;  %v1399_v25 = vcombine.high %v1395_v38, %v6823_v45 }
 0x198   :  { %v1179_v58 = vrot.slane %v1165_v17, %v4713_v27  ;;  %v5305_v7 = vrot.slane %v1164_v47, %v4713_v27  ;;  %v1188_v26 = vrot.slane %v1180_v34, %v4713_v27  ;;  %v1195_v41 = vrot.slane %v1181_v12, %v4713_v27 }
 0x19a   :  { %v4252_v44 = vpack.i.bf16 %v1379_v24, %v1179_v58  ;;  %v1196_v30 = vcombine.high %v5305_v7, %v6823_v45  ;;  %v1197_v53 = vcombine.high %v1179_v58, %v6823_v45  ;;  %v4262_v10 = vpack.i.bf16 %v1388_v62, %v1188_v26 }
 0x19b   :  { %v1115_v3 = vpop.permute.xlu1 %1114  ;;  %v1198_v50 = vcombine.high %v1188_v26, %v6823_v45  ;;  %v4272_v29 = vpack.i.bf16 %v1395_v38, %v1195_v41  ;;  %v1199_v23 = vcombine.high %v1195_v41, %v6823_v45  ;;  %v1433_v24 = vcombine.high %v1408_v28, %v1424_v61 }
 0x19c   :  { %4253 = vrot.lane.b32.xlu1 %v4252_v44, %s4629_s26  ;;  %v4247_v14 = vpack.i.bf16 %v1396_v57, %v1196_v30  ;;  %v4257_v0 = vpack.i.bf16 %v1397_v1, %v1197_v53  ;;  %v1415_v58 = vrot.slane %v1401_v52, %v4680_v8  ;;  %v1431_v57 = vrot.slane %v1417_v22, %v4680_v8 }
 0x19d   :  { %v4267_v34 = vpack.i.bf16 %v1398_v46, %v1198_v50  ;;  %v4277_v30 = vpack.i.bf16 %v1399_v25, %v1199_v23  ;;  %v1447_v26 = vrot.slane %v1433_v24, %v4713_v27 }
 0x19e   :  { %4248 = vrot.lane.b32.xlu0 %v4247_v14, %s4631_s28 }
 0x19f   :  { %v1119_v21 = vpop.permute.xlu1 %1118 }
 0x1a0   :  { %4263 = vrot.lane.b32.xlu1 %v4262_v10, %s4628_s0  ;;  %v1200_v60 = vcombine.low %v1111_v2, %v1119_v21  ;;  %v1201_v20 = vcombine.high %v1111_v2, %v1119_v21  ;;  %v1440_v2 = vrot.slane %v1432_v6, %v4713_v27 }
 0x1a2   :  { %4258 = vrot.lane.b32.xlu0 %v4257_v0, %s4636_s6  ;;  %v1208_v62 = vrot.slane %v1200_v60, %v4680_v8  ;;  %v1215_v35 = vrot.slane %v1201_v20, %v4680_v8  ;;  %v1456_v1 = vcombine.high %v1440_v2, %v6823_v45  ;;  %v1457_v0 = vcombine.high %v1447_v26, %v6823_v45 }
 0x1a3   :  { %v1123_v15 = vpop.permute.xlu1 %1122 }
 0x1a4   :  { %v1216_v47 = vcombine.low %v1115_v3, %v1123_v15  ;;  %v1217_v17 = vcombine.high %v1115_v3, %v1123_v15  ;;  %4273 = vrot.lane.b32.xlu1 %v4272_v29, %s4630_s27  ;;  %v1448_v3 = vcombine.low %v1415_v58, %v1431_v57 }
 0x1a6   :  { %v1224_v5 = vrot.slane %v1216_v47, %v4680_v8  ;;  %v1231_v11 = vrot.slane %v1217_v17, %v4680_v8  ;;  %4268 = vrot.lane.b32.xlu0 %v4267_v34, %s4633_s30  ;;  %v1455_v28 = vrot.slane %v1448_v3, %v4713_v27 }
 0x1a8   :  { %v1232_v12 = vcombine.low %v1208_v62, %v1224_v5  ;;  %v1233_v44 = vcombine.high %v1208_v62, %v1224_v5  ;;  %v1248_v14 = vcombine.low %v1215_v35, %v1231_v11  ;;  %v1458_v60 = vcombine.high %v1455_v28, %v6823_v45 }
 0x1aa   :  { %4278 = vrot.lane.b32.xlu0 %v4277_v30, %s4635_s5  ;;  %v1240_v53 = vrot.slane %v1232_v12, %v4713_v27  ;;  %v1247_v38 = vrot.slane %v1233_v44, %v4713_v27  ;;  %v1255_v50 = vrot.slane %v1248_v14, %v4713_v27 }
 0x1ac   :  { %v4282_v10 = vpack.i.bf16 %v1440_v2, %v1240_v53  ;;  %v1256_v41 = vcombine.high %v1240_v53, %v6823_v45  ;;  %v1257_v21 = vcombine.high %v1247_v38, %v6823_v45  ;;  %v4292_v46 = vpack.i.bf16 %v1447_v26, %v1247_v38 }
 0x1ad   :  { %v1258_v22 = vcombine.high %v1255_v50, %v6823_v45  ;;  %v4302_v29 = vpack.i.bf16 %v1455_v28, %v1255_v50 }
 0x1ae   :  { %4283 = vrot.lane.b32.xlu1 %v4282_v10, %s4632_s29  ;;  %v4287_v61 = vpack.i.bf16 %v1456_v1, %v1256_v41  ;;  %v4297_v52 = vpack.i.bf16 %v1457_v0, %v1257_v21 }
 0x1af   :  { %v4307_v6 = vpack.i.bf16 %v1458_v60, %v1258_v22 }
 0x1b0   :  { %4288 = vrot.lane.b32.xlu0 %v4287_v61, %s4637_s7 }
 0x1b2   :  { %4293 = vrot.lane.b32.xlu1 %v4292_v46, %s4634_s4 }
 0x1b4   :  { %4298 = vrot.lane.b32.xlu0 %v4297_v52, %s4639_s9 }
 0x1b6   :  { %4303 = vrot.lane.b32.xlu1 %v4302_v29, %s4638_s8 }
 0x1b8   :  { %4308 = vrot.lane.b32.xlu0 %v4307_v6, %s4641_s11 }
 0x1ba   :  { %1532 = vrot.lane.b32.xlu1 %v5259_v32, %s4640_s10 }
 0x1bc   :  { %1534 = vrot.lane.b32.xlu0 %v5294_v19, %s4640_s10 }
 0x1be   :  { %1536 = vrot.lane.b32.xlu1 %v5261_v9, %s4640_s10 }
 0x1c0   :  { %1538 = vrot.lane.b32.xlu0 %v5297_v31, %s4640_s10 }
 0x1c2   :  { %1540 = vrot.lane.b32.xlu1 %v5263_v48, %s4640_s10 }
 0x1c4   :  { %1542 = vrot.lane.b32.xlu0 %v5299_v49, %s4640_s10 }
 0x1c6   :  { %1544 = vrot.lane.b32.xlu1 %v5265_v54, %s4640_s10 }
 0x1c8   :  { %1546 = vrot.lane.b32.xlu0 %v5301_v56, %s4640_s10 }
 0x20e   :  { %v5378_v15 = vpop.permute.xlu1 %4253 }
 0x210   :  { %v5380_v23 = vpop.permute.xlu0 %4248 }
 0x212   :  { %v5384_v20 = vpop.permute.xlu1 %4263 }
 0x214   :  { %v5382_v25 = vpop.permute.xlu0 %4258 }
 0x216   :  { %v5388_v17 = vpop.permute.xlu1 %4273 }
 0x218   :  { %v5386_v47 = vpop.permute.xlu0 %4268 }
 0x21c   :  { %v5390_v34 = vpop.permute.xlu0 %4278 }
 0x220   :  { %v5392_v24 = vpop.permute.xlu1 %4283 }
 0x222   :  { %v5394_v58 = vpop.permute.xlu0 %4288 }
 0x224   :  { %v5396_v57 = vpop.permute.xlu1 %4293 }
 0x226   :  { %v5398_v62 = vpop.permute.xlu0 %4298 }
 0x228   :  { %v5400_v5 = vpop.permute.xlu1 %4303 }
 0x22a   :  { %v5402_v11 = vpop.permute.xlu0 %4308 }
 0x22c   :  { %v1533_v2 = vpop.permute.xlu1 %1532 }
 0x22e   :  { %v1535_v35 = vpop.permute.xlu0 %1534 }
 0x230   :  { %v1537_v12 = vpop.permute.xlu1 %1536 }
 0x232   :  { %v1539_v44 = vpop.permute.xlu0 %1538 }
 0x234   :  { %v1541_v30 = vpop.permute.xlu1 %1540 }
 0x235   :  { %v1556_v3 = vcombine.low %v1533_v2, %v1541_v30  ;;  %v1557_v53 = vcombine.high %v1533_v2, %v1541_v30 }
 0x236   :  { %v1543_v26 = vpop.permute.xlu0 %1542 }
 0x237   :  { %v1564_v10 = vrot.slane %v1556_v3, %v4680_v8  ;;  %v1571_v21 = vrot.slane %v1557_v53, %v4680_v8  ;;  %v1624_v46 = vcombine.low %v1535_v35, %v1543_v26  ;;  %v1625_v53 = vcombine.high %v1535_v35, %v1543_v26 }
 0x238   :  { %v1545_v14 = vpop.permute.xlu1 %1544 }
 0x239   :  { %v1572_v1 = vcombine.low %v1537_v12, %v1545_v14  ;;  %v1573_v38 = vcombine.high %v1537_v12, %v1545_v14  ;;  %v1632_v12 = vrot.slane %v1624_v46, %v4680_v8 }
 0x23a   :  { %v1547_v61 = vpop.permute.xlu0 %1546 }
 0x23b   :  { %v1580_v41 = vrot.slane %v1572_v1, %v4680_v8  ;;  %v1587_v28 = vrot.slane %v1573_v38, %v4680_v8  ;;  %v1640_v22 = vcombine.low %v1539_v44, %v1547_v61  ;;  %v1641_v1 = vcombine.high %v1539_v44, %v1547_v61 }
 0x23d   :  { %v1588_v0 = vcombine.low %v1564_v10, %v1580_v41  ;;  %v1589_v50 = vcombine.high %v1564_v10, %v1580_v41  ;;  %v1604_v52 = vcombine.low %v1571_v21, %v1587_v28  ;;  %v1605_v2 = vcombine.high %v1571_v21, %v1587_v28 }
 0x23e   :  { %v1648_v30 = vrot.slane %v1640_v22, %v4680_v8  ;;  %v1639_v28 = vrot.slane %v1625_v53, %v4680_v8  ;;  %v1655_v21 = vrot.slane %v1641_v1, %v4680_v8  ;;  %v5512_v53 = vld [vmem:[#allocation2 + $0x62] sm:$0xff]  ;;  %v5516_v1 = vld [vmem:[#allocation2 + $0x52] sm:$0xff] }
 0x23f   :  { %v1603_v60 = vrot.slane %v1589_v50, %v4713_v27  ;;  %v5410_v29 = vrot.slane %v1588_v0, %v4713_v27  ;;  %v1612_v3 = vrot.slane %v1604_v52, %v4713_v27  ;;  %v1619_v10 = vrot.slane %v1605_v2, %v4713_v27  ;;  %v5492_v2 = vld [vmem:[#allocation2 + $0x78] sm:$0x3f]  ;;  %6833 = vst [vmem:[#allocation13_spill] sm:$0xff] %v5516_v1 }
 0x240   :  { %v1656_v38 = vcombine.low %v1632_v12, %v1648_v30  ;;  %v1657_v0 = vcombine.high %v1632_v12, %v1648_v30  ;;  %v1672_v44 = vcombine.low %v1639_v28, %v1655_v21  ;;  %6831 = vst [vmem:[#allocation11_spill] sm:$0xff] %v5492_v2  ;;  %v5496_v12 = vld [vmem:[#allocation2 + $0x61] sm:$0xff]  ;;  %v5500_v30 = vld [vmem:[#allocation2 + $0x51] sm:$0xff]  ;;  %v5548_v28 = vld [vmem:[#allocation2 + $0x59] sm:$0x3f] }
 0x241   :  { %1688 = vrot.lane.b32.xlu0 %v1603_v60, %s4629_s26  ;;  %v1620_v6 = vcombine.high %v5410_v29, %v6823_v45  ;;  %v1621_v14 = vcombine.high %v1603_v60, %v6823_v45  ;;  %v1622_v41 = vcombine.high %v1612_v3, %v6823_v45  ;;  %v1623_v35 = vcombine.high %v1619_v10, %v6823_v45  ;;  %v5450_v60 = vld [vmem:[#allocation2 + $0x40] sm:$0xff]  ;;  %v5552_v21 = vld [vmem:[#allocation2 + $0x4a] sm:$0x3f] }
 0x242   :  { %v1664_v50 = vrot.slane %v1656_v38, %v4713_v27  ;;  %v1671_v26 = vrot.slane %v1657_v0, %v4713_v27  ;;  %v1679_v46 = vrot.slane %v1672_v44, %v4713_v27  ;;  %v5522_v38 = vld [vmem:[#allocation2 + $0x72] sm:$0xff]  ;;  %v5570_v44 = vld [vmem:[#allocation2 + $0x7a] sm:$0x3f] }
 0x243   :  { %1684 = vrot.lane.b32.xlu1 %v1620_v6, %s4631_s28  ;;  %v5488_v6 = vld [vmem:[#allocation2 + $0x41] sm:$0xff]  ;;  %6834 = vst [vmem:[#allocation14_spill] sm:$0xff] %v5522_v38  ;;  %v5556_v0 = vld [vmem:[#allocation2 + $0x79] sm:$0x3f]  ;;  %6836 = vst [vmem:[#allocation16_spill] sm:$0xff] %v5570_v44 }
 0x244   :  { %v1680_v61 = vcombine.high %v1664_v50, %v6823_v45  ;;  %v1681_v52 = vcombine.high %v1671_v26, %v6823_v45  ;;  %v1682_v22 = vcombine.high %v1679_v46, %v6823_v45 }
 0x245   :  { %1696 = vrot.lane.b32.xlu0 %v1612_v3, %s4628_s0  ;;  %v5504_v3 = vld [vmem:[#allocation2 + $0x42] sm:$0xff] }
 0x246   :  { %6832 = vst [vmem:[#allocation12_spill] sm:$0xff] %v5504_v3 }
 0x247   :  { %1692 = vrot.lane.b32.xlu1 %v1621_v14, %s4636_s6  ;;  %v5508_v14 = vld [vmem:[#allocation2 + $0x71] sm:$0xff] }
 0x249   :  { %1704 = vrot.lane.b32.xlu0 %v1619_v10, %s4630_s27  ;;  %v5538_v10 = vld [vmem:[#allocation2 + $0x49] sm:$0x3f] }
 0x24b   :  { %1700 = vrot.lane.b32.xlu1 %v1622_v41, %s4633_s30  ;;  %v5544_v41 = vld [vmem:[#allocation2 + $0x69] sm:$0x3f] }
 0x24d   :  { %1712 = vrot.lane.b32.xlu0 %v1664_v50, %s4632_s29  ;;  %v5560_v50 = vld [vmem:[#allocation2 + $0x6a] sm:$0x3f] }
 0x24f   :  { %1708 = vrot.lane.b32.xlu1 %v1623_v35, %s4635_s5  ;;  %v5564_v35 = vld [vmem:[#allocation2 + $0x5a] sm:$0x3f] }
 0x250   :  { %6835 = vst [vmem:[#allocation15_spill] sm:$0xff] %v5564_v35 }
 0x251   :  { %1720 = vrot.lane.b32.xlu0 %v1671_v26, %s4634_s4 }
 0x253   :  { %1716 = vrot.lane.b32.xlu1 %v1680_v61, %s4637_s7 }
 0x255   :  { %1728 = vrot.lane.b32.xlu0 %v1679_v46, %s4638_s8  ;;  %v4250_v46 = vunpack.i.l.bf16 %v5380_v23 }
 0x257   :  { %1724 = vrot.lane.b32.xlu1 %v1681_v52, %s4639_s9 }
 0x259   :  { %1748 = vrot.lane.b32.xlu0 %v5259_v32, %s4637_s7  ;;  %v5456_v32 = vld [vmem:[#allocation2 + $0x60] sm:$0xff] }
 0x25b   :  { %1732 = vrot.lane.b32.xlu1 %v1682_v22, %s4641_s11 }
 0x25d   :  { %1752 = vrot.lane.b32.xlu0 %v5261_v9, %s4637_s7  ;;  %v5460_v9 = vld [vmem:[#allocation2 + $0x50] sm:$0xff] }
 0x25f   :  { %1750 = vrot.lane.b32.xlu1 %v5294_v19, %s4637_s7  ;;  %v5474_v19 = vld [vmem:[#allocation2 + $0x48] sm:$0x3f] }
 0x260   :  { %6828 = vst [vmem:[#allocation8_spill] sm:$0xff] %v5474_v19 }
 0x261   :  { %1756 = vrot.lane.b32.xlu0 %v5263_v48, %s4637_s7  ;;  %v5466_v48 = vld [vmem:[#allocation2 + $0x70] sm:$0xff] }
 0x263   :  { %1754 = vrot.lane.b32.xlu1 %v5297_v31, %s4637_s7  ;;  %v5480_v31 = vld [vmem:[#allocation2 + $0x68] sm:$0x3f] }
 0x264   :  { %6829 = vst [vmem:[#allocation10_spill] sm:$0xff] %v5480_v31 }
 0x265   :  { %2295 = vrot.lane.b32.xlu0 %v5450_v60, %s4640_s10 }
 0x267   :  { %1758 = vrot.lane.b32.xlu1 %v5299_v49, %s4637_s7  ;;  %v5484_v49 = vld [vmem:[#allocation2 + $0x58] sm:$0x3f] }
 0x268   :  { %6830 = vst [vmem:[#allocation9_spill] sm:$0xff] %v5484_v49 }
 0x269   :  { %2303 = vrot.lane.b32.xlu0 %v5456_v32, %s4640_s10 }
 0x26b   :  { %2299 = vrot.lane.b32.xlu1 %v5460_v9, %s4640_s10 }
 0x26d   :  { %2511 = vrot.lane.b32.xlu0 %v5450_v60, %s4637_s7 }
 0x26f   :  { %2307 = vrot.lane.b32.xlu1 %v5466_v48, %s4640_s10 }
 0x271   :  { %2519 = vrot.lane.b32.xlu0 %v5456_v32, %s4637_s7 }
 0x273   :  { %2515 = vrot.lane.b32.xlu1 %v5460_v9, %s4637_s7 }
 0x275   :  { %2297 = vrot.lane.b32.xlu0 %v5474_v19, %s4640_s10 }
 0x277   :  { %2523 = vrot.lane.b32.xlu1 %v5466_v48, %s4637_s7 }
 0x279   :  { %2305 = vrot.lane.b32.xlu0 %v5480_v31, %s4640_s10 }
 0x27b   :  { %2301 = vrot.lane.b32.xlu1 %v5484_v49, %s4640_s10 }
 0x27d   :  { %3151 = vrot.lane.b32.xlu0 %v5488_v6, %s4637_s7 }
 0x27f   :  { %2309 = vrot.lane.b32.xlu1 %v5492_v2, %s4640_s10 }
 0x281   :  { %3159 = vrot.lane.b32.xlu0 %v5496_v12, %s4637_s7 }
 0x283   :  { %3155 = vrot.lane.b32.xlu1 %v5500_v30, %s4637_s7 }
 0x285   :  { %3575 = vrot.lane.b32.xlu0 %v5504_v3, %s4640_s10 }
 0x287   :  { %3163 = vrot.lane.b32.xlu1 %v5508_v14, %s4637_s7 }
 0x289   :  { %3583 = vrot.lane.b32.xlu0 %v5512_v53, %s4640_s10 }
 0x28b   :  { %3579 = vrot.lane.b32.xlu1 %v5516_v1, %s4640_s10 }
 0x28d   :  { %2513 = vrot.lane.b32.xlu0 %v5474_v19, %s4637_s7  ;;  %v4251_v19 = vunpack.i.h.bf16 %v5380_v23 }
 0x28f   :  { %3587 = vrot.lane.b32.xlu1 %v5522_v38, %s4640_s10 }
 0x291   :  { %2521 = vrot.lane.b32.xlu0 %v5480_v31, %s4637_s7  ;;  %v4260_v31 = vunpack.i.l.bf16 %v5382_v25 }
 0x293   :  { %2517 = vrot.lane.b32.xlu1 %v5484_v49, %s4637_s7 }
 0x295   :  { %2935 = vrot.lane.b32.xlu0 %v5488_v6, %s4640_s10 }
 0x297   :  { %2525 = vrot.lane.b32.xlu1 %v5492_v2, %s4637_s7  ;;  %v1095_v2 = vsel %vm218_vm0, %v5079_v16, %v5245_v59  ;;  %v4295_v16 = vunpack.i.l.bf16 %v5396_v57 }
 0x299   :  { %2943 = vrot.lane.b32.xlu0 %v5496_v12, %s4640_s10 }
 0x29b   :  { %2939 = vrot.lane.b32.xlu1 %v5500_v30, %s4640_s10 }
 0x29d   :  { %3153 = vrot.lane.b32.xlu0 %v5538_v10, %s4637_s7 }
 0x29f   :  { %2947 = vrot.lane.b32.xlu1 %v5508_v14, %s4640_s10 }
 0x2a1   :  { %3161 = vrot.lane.b32.xlu0 %v5544_v41, %s4637_s7 }
 0x2a3   :  { %3157 = vrot.lane.b32.xlu1 %v5548_v28, %s4637_s7 }
 0x2a5   :  { %3577 = vrot.lane.b32.xlu0 %v5552_v21, %s4640_s10 }
 0x2a7   :  { %3165 = vrot.lane.b32.xlu1 %v5556_v0, %s4637_s7 }
 0x2a9   :  { %3585 = vrot.lane.b32.xlu0 %v5560_v50, %s4640_s10 }
 0x2ab   :  { %3581 = vrot.lane.b32.xlu1 %v5564_v35, %s4640_s10 }
 0x2ad   :  { %2937 = vrot.lane.b32.xlu0 %v5538_v10, %s4640_s10 }
 0x2af   :  { %3589 = vrot.lane.b32.xlu1 %v5570_v44, %s4640_s10 }
 0x2b1   :  { %2945 = vrot.lane.b32.xlu0 %v5544_v41, %s4640_s10 }
 0x2b3   :  { %2941 = vrot.lane.b32.xlu1 %v5548_v28, %s4640_s10  ;;  %v1689_v26 = vpop.permute.xlu0 %1688 }
 0x2b5   :  { %v1685_v61 = vpop.permute.xlu1 %1684  ;;  %1760 = vrot.lane.b32.xlu0 %v5265_v54, %s4637_s7  ;;  %v1311_v54 = vsel %vm218_vm0, %v5305_v7, %v4250_v46  ;;  %v1511_v46 = vsel %vm218_vm0, %v5288_v43, %v4251_v19  ;;  %v4300_v43 = vunpack.i.l.bf16 %v5398_v62 }
 0x2b6   :  { %v1735_v22 = vsel %vm218_vm0, %v5410_v29, %v1685_v61  ;;  %v4255_v29 = vunpack.i.l.bf16 %v5378_v15 }
 0x2b7   :  { %2949 = vrot.lane.b32.xlu1 %v5556_v0, %s4640_s10  ;;  %v1697_v52 = vpop.permute.xlu0 %1696  ;;  %v1736_v61 = vsel %vm220_vm1, %v1735_v22, %v1689_v26  ;;  %v4290_v22 = vunpack.i.l.bf16 %v5394_v58 }
 0x2b8   :  { %v1312_v26 = vsel %vm220_vm1, %v1311_v54, %v4255_v29  ;;  %v4266_v29 = vunpack.i.h.bf16 %v5384_v20 }
 0x2b9   :  { %v1693_v49 = vpop.permute.xlu1 %1692  ;;  %3795 = vrot.lane.b32.xlu0 %v5516_v1, %s4637_s7  ;;  %v1096_v1 = vsel %vm220_vm1, %v1095_v2, %v5135_v4  ;;  %v4256_v4 = vunpack.i.h.bf16 %v5378_v15  ;;  %v1313_v2 = vsel %vm222_vm2, %v1312_v26, %v4260_v31  ;;  %v1320_v31 = vsel %vm236_vm7, %v4290_v22, %v4295_v16 }
 0x2ba   :  { %v1737_v59 = vsel %vm222_vm2, %v1736_v61, %v1693_v49  ;;  %v1097_v7 = vsel %vm222_vm2, %v1096_v1, %v5253_v42  ;;  %v4270_v49 = vunpack.i.l.bf16 %v5386_v47  ;;  %v4265_v42 = vunpack.i.l.bf16 %v5384_v20 }
 0x2bb   :  { %3791 = vrot.lane.b32.xlu1 %v5504_v3, %s4637_s7  ;;  %v1705_v45 = vpop.permute.xlu0 %1704  ;;  %v4261_v3 = vunpack.i.h.bf16 %v5382_v25  ;;  %v1738_v25 = vsel %vm224_vm3, %v1737_v59, %v1697_v52  ;;  %v1098_v19 = vsel %vm224_vm3, %v1097_v7, %v5139_v63  ;;  %v1512_v15 = vsel %vm220_vm1, %v1511_v46, %v4256_v4 }
 0x2bc   :  { %v1314_v52 = vsel %vm224_vm3, %v1313_v2, %v4265_v42  ;;  %v4280_v59 = vunpack.i.l.bf16 %v5390_v34  ;;  %v4296_v16 = vunpack.i.h.bf16 %v5396_v57  ;;  %v4275_v20 = vunpack.i.l.bf16 %v5388_v17 }
 0x2bd   :  { %v1701_v23 = vpop.permute.xlu1 %1700  ;;  %3803 = vrot.lane.b32.xlu0 %v5522_v38, %s4637_s7  ;;  %v1513_v26 = vsel %vm222_vm2, %v1512_v15, %v4261_v3  ;;  %v4271_v38 = vunpack.i.h.bf16 %v5386_v47  ;;  %v1315_v63 = vsel %vm226_vm4, %v1314_v52, %v4270_v49  ;;  %v4285_v3 = vunpack.i.l.bf16 %v5392_v24 }
 0x2be   :  { %v1739_v1 = vsel %vm226_vm4, %v1738_v25, %v1701_v23  ;;  %v4305_v23 = vunpack.i.l.bf16 %v5400_v5  ;;  %v1321_v47 = vsel %vm238_vm8, %v1320_v31, %v4300_v43  ;;  %v1099_v4 = vsel %vm226_vm4, %v1098_v19, %v5257_v36 }
 0x2bf   :  { %3799 = vrot.lane.b32.xlu1 %v5512_v53, %s4637_s7  ;;  %v1713_v61 = vpop.permute.xlu0 %1712  ;;  %v1740_v46 = vsel %vm228_vm5, %v1739_v1, %v1705_v45  ;;  %v1514_v2 = vsel %vm224_vm3, %v1513_v26, %v4266_v29  ;;  %v4291_v57 = vunpack.i.h.bf16 %v5394_v58  ;;  %v1316_v25 = vsel %vm228_vm5, %v1315_v63, %v4275_v20 }
 0x2c0   :  { %v4301_v43 = vunpack.i.h.bf16 %v5398_v62  ;;  %v4310_v45 = vunpack.i.l.bf16 %v5402_v11  ;;  %v4281_v36 = vunpack.i.h.bf16 %v5390_v34  ;;  %v1317_v19 = vsel %vm230_vm6, %v1316_v25, %v4280_v59 }
 0x2c1   :  { %v1709_v54 = vpop.permute.xlu1 %1708  ;;  %3793 = vrot.lane.b32.xlu0 %v5552_v21, %s4637_s7  ;;  %v1520_v58 = vsel %vm236_vm7, %v4291_v57, %v4296_v16  ;;  %v1322_v15 = vsel %vm240_vm11, %v1321_v47, %v4305_v23  ;;  %v4286_v1 = vunpack.i.h.bf16 %v5392_v24  ;;  %v1318_v62 = vsel %vm232_vm9, %v1317_v19, %v4285_v3 }
 0x2c2   :  { %v1741_v49 = vsel %vm230_vm6, %v1740_v46, %v1709_v54  ;;  %v4306_v34 = vunpack.i.h.bf16 %v5400_v5  ;;  %v1521_v59 = vsel %vm238_vm8, %v1520_v58, %v4301_v43  ;;  %v1323_v16 = vsel %vm242_vm12, %v1322_v15, %v4310_v45 }
 0x2c3   :  { %1762 = vrot.lane.b32.xlu1 %v5301_v56, %s4637_s7  ;;  %v1721_v7 = vpop.permute.xlu0 %1720  ;;  %v1515_v56 = vsel %vm226_vm4, %v1514_v2, %v4271_v38  ;;  %v4276_v38 = vunpack.i.h.bf16 %v5388_v17  ;;  %v1742_v54 = vsel %vm232_vm9, %v1741_v49, %v1713_v61  ;;  %v1100_v24 = vsel %vm228_vm5, %v1099_v4, %v5222_v18 }
 0x2c4   :  { %v1104_v5 = vsel %vm236_vm7, %v5273_v40, %v5251_v33  ;;  %v1319_v23 = vsel %vm234_vm10, %v1318_v62, %v4290_v22  ;;  %v4311_v18 = vunpack.i.h.bf16 %v5402_v11  ;;  %v1101_v33 = vsel %vm230_vm6, %v1100_v24, %v5267_v37 }
 0x2c5   :  { %v1717_v42 = vpop.permute.xlu1 %1716  ;;  %3801 = vrot.lane.b32.xlu0 %v5560_v50, %s4637_s7  ;;  %v1516_v63 = vsel %vm228_vm5, %v1515_v56, %v4276_v38  ;;  %v1105_v20 = vsel %vm238_vm8, %v1104_v5, %v5281_v13  ;;  %v1522_v46 = vsel %vm240_vm11, %v1521_v59, %v4306_v34  ;;  %v1979_v4 = vrot.slane %v1323_v16, 4 }
 0x2c6   :  { %v1743_v29 = vsel %vm234_vm10, %v1742_v54, %v1717_v42  ;;  %v1744_v26 = vsel %vm236_vm7, %v1717_v42, %v1721_v7  ;;  %v1517_v61 = vsel %vm230_vm6, %v1516_v63, %v4281_v36  ;;  %v1978_v49 = vrot.slane %v1319_v23, 4 }
 0x2c7   :  { %v1729_v31 = vpop.permute.xlu0 %1728  ;;  %3797 = vrot.lane.b32.xlu1 %v5564_v35, %s4637_s7  ;;  %v1518_v3 = vsel %vm232_vm9, %v1517_v61, %v4286_v1  ;;  %v1984_v47 = vrot.slane %v1743_v29, 4  ;;  %v1106_v13 = vsel %vm240_vm11, %v1105_v20, %v5255_v55  ;;  %v1102_v37 = vsel %vm232_vm9, %v1101_v33, %v5237_v39 }
 0x2c8   :  { %v1519_v11 = vsel %vm234_vm10, %v1518_v3, %v4291_v57  ;;  %v1107_v43 = vsel %vm242_vm12, %v1106_v13, %v5285_v51  ;;  %v1523_v45 = vsel %vm242_vm12, %v1522_v46, %v4311_v18  ;;  %v1103_v19 = vsel %vm234_vm10, %v1102_v37, %v5273_v40 }
 0x2c9   :  { %v1725_v52 = vpop.permute.xlu1 %1724  ;;  %v1995_v36 = vsel %vm1988_vm13, %v1519_v11, %v1984_v47  ;;  %v1994_v55 = vsel %vm1988_vm13, %v1107_v43, %v1979_v4  ;;  %v2735_v40 = vcombine.low %v5488_v6, %v5496_v12  ;;  %v2751_v62 = vcombine.low %v5500_v30, %v5508_v14 }
 0x2ca   :  { %v1745_v17 = vsel %vm238_vm8, %v1744_v26, %v1725_v52  ;;  %v2736_v63 = vcombine.high %v5488_v6, %v5496_v12  ;;  %v2752_v59 = vcombine.high %v5500_v30, %v5508_v14  ;;  %v2095_v24 = vcombine.low %v5450_v60, %v5456_v32 }
 0x2cb   :  { %v5677_v7 = vpop.permute.xlu0 %1748  ;;  %3805 = vrot.lane.b32.xlu1 %v5570_v44, %s4637_s7  ;;  %v1746_v2 = vsel %vm240_vm11, %v1745_v17, %v1729_v31  ;;  %v1993_v31 = vsel %vm1988_vm13, %v1103_v19, %v1978_v49  ;;  %v2743_v29 = vrot.slane %v2735_v40, %v4680_v8  ;;  %v2759_v26 = vrot.slane %v2751_v62, %v4680_v8 }
 0x2cc   :  { %6837 = vst [vmem:[#allocation17_spill] sm:$0xff] %v5677_v7  ;;  %v4148_v38 = vpack.c.bf16 %v1995_v36, %v1993_v31  ;;  %v2111_v5 = vcombine.low %v5460_v9, %v5466_v48  ;;  %v5731_v47 = vrot.slane %v2736_v63, %v4680_v8  ;;  %v5734_v6 = vrot.slane %v2752_v59, %v4680_v8 }
 0x2cd   :  { %v1733_v22 = vpop.permute.xlu1 %1732  ;;  %v2767_v61 = vcombine.low %v2743_v29, %v2759_v26  ;;  %v2768_v18 = vcombine.high %v2743_v29, %v2759_v26  ;;  %v5741_v46 = vrot.slane %v2095_v24, %v4680_v8  ;;  %v2112_v63 = vcombine.high %v5460_v9, %v5466_v48 }
 0x2ce   :  { %v1747_v42 = vsel %vm242_vm12, %v1746_v2, %v1733_v22  ;;  %v5744_v4 = vrot.slane %v2111_v5, %v4680_v8  ;;  %v2783_v43 = vcombine.low %v5731_v47, %v5734_v6 }
 0x2cf   :  { %v1985_v56 = vrot.slane %v1747_v42, 4  ;;  %v5692_v25 = vpop.permute.xlu0 %1752  ;;  %v5750_v49 = vrot.slane %v2767_v61, %v4713_v27 }
 0x2d0   :  { %6838 = vst [vmem:[#allocation18_spill] sm:$0xff] %v5692_v25  ;;  %v2791_v24 = vrot.slane %v2783_v43, %v4713_v27 }
 0x2d1   :  { %v5703_v58 = vpop.permute.xlu1 %1750  ;;  %v1996_v15 = vsel %vm1988_vm13, %v1523_v45, %v1985_v56  ;;  %6843 = vst [vmem:[#allocation23_spill] sm:$0xff] %v5750_v49  ;;  %v2782_v56 = vrot.slane %v2768_v18, %v4713_v27  ;;  %v2803_v45 = vcombine.low %v5538_v10, %v5544_v41 }
 0x2d2   :  { %6839 = vst [vmem:[#allocation19_spill] sm:$0xff] %v5703_v58  ;;  %v4146_v57 = vpack.c.bf16 %v1996_v15, %v1994_v55  ;;  %v2127_v15 = vcombine.low %v5741_v46, %v5744_v4 }
 0x2d3   :  { %v5708_v39 = vpop.permute.xlu0 %1756  ;;  %v2811_v5 = vrot.slane %v2803_v45, %v4680_v8  ;;  %v2128_v45 = vcombine.high %v5741_v46, %v5744_v4 }
 0x2d4   :  { %6840 = vst [vmem:[#allocation20_spill] sm:$0xff] %v5708_v39  ;;  %4147 = vmatprep.subr.bf16.mxu0 %v4146_v57  ;;  %v2819_v57 = vcombine.low %v5548_v28, %v5556_v0  ;;  %v5796_v48 = vrot.slane %v2127_v15, %v4713_v27 }
 0x2d5   :  { %v5710_v51 = vpop.permute.xlu1 %1754  ;;  %4149 = vmatpush1.bf16.msra.mxu0 %v4148_v38 }
 0x2d6   :  { %6841 = vst [vmem:[#allocation21_spill] sm:$0xff] %v5710_v51  ;;  %6846 = vst [vmem:[#allocation25_spill] sm:$0xff] %v5796_v48 }
 0x2d7   :  { %v2296_v1 = vpop.permute.xlu0 %2295 }
 0x2d9   :  { %v5716_v54 = vpop.permute.xlu1 %1758 }
 0x2da   :  { %6842 = vst [vmem:[#allocation22_spill] sm:$0xff] %v5716_v54 }
 0x2db   :  { %v2304_v34 = vpop.permute.xlu0 %2303 }
 0x2dc   :  { %v2319_v17 = vcombine.low %v2296_v1, %v2304_v34  ;;  %v2320_v12 = vcombine.high %v2296_v1, %v2304_v34  ;;  %v6845_v1 = vmov 0.0  }
 0x2dd   :  { %v2300_v52 = vpop.permute.xlu1 %2299  ;;  %v2799_v40 = vcombine.high %v5750_v49, %v6845_v1  ;;  %v2800_v26 = vcombine.high %v2782_v56, %v6845_v1 }
 0x2de   :  { %v2327_v14 = vrot.slane %v2319_v17, %v4680_v8  ;;  %v5754_v11 = vrot.slane %v2320_v12, %v4680_v8 }
 0x2df   :  { %v5724_v16 = vpop.permute.xlu0 %2511 }
 0x2e1   :  { %v2308_v23 = vpop.permute.xlu1 %2307 }
 0x2e2   :  { %v2335_v20 = vcombine.low %v2300_v52, %v2308_v23  ;;  %v2336_v3 = vcombine.high %v2300_v52, %v2308_v23  ;;  %v2096_v52 = vcombine.high %v5450_v60, %v5456_v32 }
 0x2e3   :  { %v5736_v30 = vpop.permute.xlu0 %2519 }
 0x2e4   :  { %v2343_v33 = vrot.slane %v2335_v20, %v4680_v8  ;;  %v5747_v22 = vrot.slane %v2336_v3, %v4680_v8  ;;  %v2535_v19 = vcombine.low %v5724_v16, %v5736_v30  ;;  %v2827_v20 = vrot.slane %v2819_v57, %v4680_v8 }
 0x2e5   :  { %v2516_v2 = vpop.permute.xlu1 %2515  ;;  %v2159_v57 = vcombine.high %v5796_v48, %v6845_v1 }
 0x2e6   :  { %v2351_v42 = vcombine.low %v2327_v14, %v2343_v33  ;;  %v2352_v13 = vcombine.high %v2327_v14, %v2343_v33  ;;  %v2367_v31 = vcombine.low %v5754_v11, %v5747_v22  ;;  %v2543_v61 = vrot.slane %v2535_v19, %v4680_v8 }
 0x2e7   :  { %v5756_v37 = vpop.permute.xlu0 %2297  ;;  %v5799_v14 = vrot.slane %v2096_v52, %v4680_v8  ;;  %v5802_v33 = vrot.slane %v2112_v63, %v4680_v8  ;;  %v2835_v46 = vcombine.low %v2811_v5, %v2827_v20 }
 0x2e8   :  { %v5763_v36 = vrot.slane %v2351_v42, %v4713_v27  ;;  %v2366_v55 = vrot.slane %v2352_v13, %v4713_v27  ;;  %v2375_v9 = vrot.slane %v2367_v31, %v4713_v27  ;;  %v2801_v13 = vcombine.high %v2791_v24, %v6845_v1 }
 0x2e9   :  { %v2524_v38 = vpop.permute.xlu1 %2523  ;;  %v2836_v31 = vcombine.high %v2811_v5, %v2827_v20  ;;  %v2143_v5 = vcombine.low %v5799_v14, %v5802_v33 }
 0x2ea   :  { %6844 = vst [vmem:[#allocation24_spill] sm:$0xff] %v5763_v36  ;;  %v2551_v62 = vcombine.low %v2516_v2, %v2524_v38  ;;  %v4317_v34 = vpack.i.bf16 %v2782_v56, %v2366_v55  ;;  %v2383_v29 = vcombine.high %v5763_v36, %v6845_v1  ;;  %v2384_v17 = vcombine.high %v2366_v55, %v6845_v1 }
 0x2eb   :  { %v5783_v59 = vpop.permute.xlu0 %2305  ;;  %v2552_v3 = vcombine.high %v2516_v2, %v2524_v38  ;;  %v2536_v56 = vcombine.high %v5724_v16, %v5736_v30  ;;  %v4337_v15 = vpack.i.bf16 %v2791_v24, %v2375_v9  ;;  %v2850_v24 = vrot.slane %v2836_v31, %v4713_v27 }
 0x2ec   :  { %v2559_v23 = vrot.slane %v2551_v62, %v4680_v8  ;;  %4318 = vrot.lane.b32.xlu1 %v4317_v34, %s4629_s26  ;;  %v4312_v32 = vpack.i.bf16 %v2799_v40, %v2383_v29  ;;  %v4327_v12 = vpack.i.bf16 %v2800_v26, %v2384_v17  ;;  %v2387_v2 = vcombine.low %v5756_v37, %v5783_v59 }
 0x2ed   :  { %v5792_v60 = vpop.permute.xlu1 %2301  ;;  %v5823_v16 = vrot.slane %v2552_v3, %v4680_v8  ;;  %v2385_v40 = vcombine.high %v2375_v9, %v6845_v1  ;;  %v5833_v62 = vrot.slane %v2536_v56, %v4680_v8  ;;  %v2142_v26 = vrot.slane %v2128_v45, %v4713_v27 }
 0x2ee   :  { %v2567_v18 = vcombine.low %v2543_v61, %v2559_v23  ;;  %4313 = vrot.lane.b32.xlu0 %v4312_v32, %s4631_s28  ;;  %v2568_v19 = vcombine.high %v2543_v61, %v2559_v23  ;;  %v2395_v34 = vrot.slane %v2387_v2, %v4680_v8  ;;  %v2804_v36 = vcombine.high %v5538_v10, %v5544_v41 }
 0x2ef   :  { %v5805_v42 = vpop.permute.xlu0 %3151  ;;  %v2583_v61 = vcombine.low %v5833_v62, %v5823_v16  ;;  %v4347_v32 = vpack.i.bf16 %v2801_v13, %v2385_v40  ;;  %v5860_v13 = vrot.slane %v2835_v46, %v4713_v27 }
 0x2f0   :  { %v5811_v43 = vrot.slane %v2567_v18, %v4713_v27  ;;  %4328 = vrot.lane.b32.xlu1 %v4327_v12, %s4636_s6  ;;  %v2582_v17 = vrot.slane %v2568_v19, %v4713_v27  ;;  %v2160_v18 = vcombine.high %v2142_v26, %v6845_v1 }
 0x2f1   :  { %v5818_v55 = vpop.permute.xlu1 %2309 }
 0x2f2   :  { %6847 = vst [vmem:[#allocation26_spill] sm:$0xff] %v5811_v43  ;;  %v2403_v30 = vcombine.low %v5792_v60, %v5818_v55  ;;  %v2599_v38 = vcombine.high %v5811_v43, %v6845_v1  ;;  %v4332_v2 = vpack.i.bf16 %v2582_v17, %v2142_v26  ;;  %v2600_v45 = vcombine.high %v2582_v17, %v6845_v1 }
 0x2f3   :  { %v5830_v4 = vpop.permute.xlu0 %3159  ;;  %v2860_v17 = vcombine.high %v2850_v24, %v6845_v1 }
 0x2f4   :  { %v2411_v29 = vrot.slane %v2403_v30, %v4680_v8  ;;  %4338 = vrot.lane.b32.xlu1 %v4337_v15, %s4628_s0  ;;  %v4322_v63 = vpack.i.bf16 %v2599_v38, %v2159_v57  ;;  %v2151_v15 = vrot.slane %v2143_v5, %v4713_v27  ;;  %v2591_v57 = vrot.slane %v2583_v61, %v4713_v27 }
 0x2f5   :  { %v5839_v52 = vpop.permute.xlu1 %3155  ;;  %v3175_v38 = vcombine.low %v5805_v42, %v5830_v4  ;;  %v4342_v46 = vpack.i.bf16 %v2600_v45, %v2160_v18  ;;  %v6851_v45 = vld [vmem:[#allocation9_spill] sm:$0xff] }
 0x2f6   :  { %v2419_v23 = vcombine.low %v2395_v34, %v2411_v29  ;;  %v2420_v20 = vcombine.high %v2395_v34, %v2411_v29  ;;  %4323 = vrot.lane.b32.xlu0 %v4322_v63, %s4631_s28  ;;  %v2859_v29 = vcombine.high %v5860_v13, %v6845_v1  ;;  %v4367_v26 = vpack.i.bf16 %v2591_v57, %v2151_v15 }
 0x2f7   :  { %v5848_v9 = vpop.permute.xlu0 %3575  ;;  %v2161_v43 = vcombine.high %v2151_v15, %v6845_v1 }
 0x2f8   :  { %4348 = vrot.lane.b32.xlu1 %v4347_v32, %s4633_s30  ;;  %v2434_v3 = vrot.slane %v2420_v20, %v4713_v27  ;;  %v5854_v12 = vrot.slane %v2419_v23, %v4713_v27  ;;  %v6848_v20 = vld [vmem:[#allocation10_spill] sm:$0xff]  ;;  %v6849_v32 = vld [vmem:[#allocation8_spill] sm:$0xff] }
 0x2f9   :  { %v5856_v56 = vpop.permute.xlu1 %3163  ;;  %v2163_v18 = vcombine.low %v6849_v32, %v6848_v20 }
 0x2fa   :  { %v4357_v19 = vpack.i.bf16 %v2850_v24, %v2434_v3  ;;  %v3191_v31 = vcombine.low %v5839_v52, %v5856_v56  ;;  %4333 = vrot.lane.b32.xlu0 %v4332_v2, %s4629_s26  ;;  %v2443_v34 = vcombine.high %v5854_v12, %v6845_v1  ;;  %v2444_v63 = vcombine.high %v2434_v3, %v6845_v1  ;;  %v6850_v2 = vld [vmem:[#allocation11_spill] sm:$0xff] }
 0x2fb   :  { %v5867_v30 = vpop.permute.xlu0 %3583  ;;  %v2179_v3 = vcombine.low %v6851_v45, %v6850_v2  ;;  %v5894_v24 = vrot.slane %v3175_v38, %v4680_v8  ;;  %v2171_v15 = vrot.slane %v2163_v18, %v4680_v8 }
 0x2fc   :  { %4358 = vrot.lane.b32.xlu1 %v4357_v19, %s4634_s4  ;;  %v5881_v5 = vrot.slane %v3191_v31, %v4680_v8  ;;  %v3599_v23 = vcombine.low %v5848_v9, %v5867_v30  ;;  %v4352_v31 = vpack.i.bf16 %v2859_v29, %v2443_v34  ;;  %v4377_v48 = vpack.i.bf16 %v2860_v17, %v2444_v63 }
 0x2fd   :  { %v5872_v40 = vpop.permute.xlu1 %3579  ;;  %v2820_v34 = vcombine.high %v5548_v28, %v5556_v0  ;;  %v2187_v10 = vrot.slane %v2179_v3, %v4680_v8  ;;  %v2818_v0 = vrot.slane %v2804_v36, %v4680_v8  ;;  %v2388_v3 = vcombine.high %v5756_v37, %v5783_v59 }
 0x2fe   :  { %4343 = vrot.lane.b32.xlu0 %v4342_v46, %s4636_s6  ;;  %v3207_v49 = vcombine.low %v5894_v24, %v5881_v5  ;;  %v3607_v29 = vrot.slane %v3599_v23, %v4680_v8  ;;  %v2368_v36 = vcombine.high %v5754_v11, %v5747_v22 }
 0x2ff   :  { %v5884_v61 = vpop.permute.xlu0 %2513  ;;  %v2834_v18 = vrot.slane %v2820_v34, %v4680_v8  ;;  %v2195_v34 = vcombine.low %v2171_v15, %v2187_v10 }
 0x300   :  { %4368 = vrot.lane.b32.xlu1 %v4367_v26, %s4628_s0  ;;  %v2601_v26 = vcombine.high %v2591_v57, %v6845_v1  ;;  %v2404_v57 = vcombine.high %v5792_v60, %v5818_v55  ;;  %v5924_v23 = vrot.slane %v3207_v49, %v4713_v27  ;;  %v2784_v60 = vcombine.high %v5731_v47, %v5734_v6  ;;  %v6855_v6 = vld [vmem:[#allocation14_spill] sm:$0xff] }
 0x301   :  { %v5896_v19 = vpop.permute.xlu1 %3587  ;;  %v2851_v51 = vcombine.low %v2818_v0, %v2834_v18  ;;  %v2382_v7 = vrot.slane %v2368_v36, %v4713_v27  ;;  %v2164_v0 = vcombine.high %v6849_v32, %v6848_v20 }
 0x302   :  { %v3615_v46 = vcombine.low %v5872_v40, %v5896_v19  ;;  %4353 = vrot.lane.b32.xlu0 %v4352_v31, %s4637_s7  ;;  %v4387_v28 = vpack.i.bf16 %v2601_v26, %v2161_v43  ;;  %6852 = vst [vmem:[#allocation10_spill] sm:$0xff] %v5924_v23  ;;  %v2196_v43 = vcombine.high %v2171_v15, %v2187_v10 }
 0x303   :  { %v5907_v38 = vpop.permute.xlu0 %2521  ;;  %v2418_v55 = vrot.slane %v2404_v57, %v4680_v8  ;;  %v3239_v57 = vcombine.high %v5924_v23, %v6845_v1  ;;  %v2798_v54 = vrot.slane %v2784_v60, %v4713_v27  ;;  %v2858_v36 = vrot.slane %v2851_v51, %v4713_v27 }
 0x304   :  { %v3623_v63 = vrot.slane %v3615_v46, %v4680_v8  ;;  %4378 = vrot.lane.b32.xlu1 %v4377_v48, %s4639_s9  ;;  %v2603_v31 = vcombine.low %v5884_v61, %v5907_v38  ;;  %v2210_v39 = vrot.slane %v2196_v43, %v4713_v27 }
 0x305   :  { %v5916_v41 = vpop.permute.xlu1 %2517 }
 0x306   :  { %v3631_v17 = vcombine.low %v3607_v29, %v3623_v63  ;;  %v2611_v26 = vrot.slane %v2603_v31, %v4680_v8  ;;  %v2402_v31 = vrot.slane %v2388_v3, %v4680_v8 }
 0x307   :  { %v5926_v48 = vpop.permute.xlu0 %2935 }
 0x308   :  { %v5932_v46 = vrot.slane %v3631_v17, %v4713_v27  ;;  %4388 = vrot.lane.b32.xlu1 %v4387_v28, %s4633_s30  ;;  %v6854_v17 = vld [vmem:[#allocation12_spill] sm:$0xff]  ;;  %v6856_v28 = vld [vmem:[#allocation13_spill] sm:$0xff]  ;;  %v2435_v25 = vcombine.low %v2402_v31, %v2418_v55  ;;  %v3192_v31 = vcombine.high %v5839_v52, %v5856_v56  ;;  %v2386_v56 = vcombine.high %v2382_v7, %v6845_v1 }
 0x309   :  { %v5939_v49 = vpop.permute.xlu1 %2525  ;;  %v3375_v47 = vcombine.low %v6854_v17, %v5512_v53  ;;  %v3391_v22 = vcombine.low %v6856_v28, %v6855_v6 }
 0x30a   :  { %6853 = vst [vmem:[#allocation8_spill] sm:$0xff] %v5932_v46  ;;  %v2619_v37 = vcombine.low %v5916_v41, %v5939_v49  ;;  %v3663_v59 = vcombine.high %v5932_v46, %v6845_v1  ;;  %v3632_v46 = vcombine.high %v3607_v29, %v3623_v63  ;;  %v3208_v29 = vcombine.high %v5894_v24, %v5881_v5 }
 0x30b   :  { %v5951_v11 = vpop.permute.xlu0 %2943  ;;  %v5965_v3 = vrot.slane %v3375_v47, %v4680_v8  ;;  %v5968_v60 = vrot.slane %v3391_v22, %v4680_v8  ;;  %v4372_v5 = vpack.i.bf16 %v2798_v54, %v2382_v7  ;;  %v2442_v51 = vrot.slane %v2435_v25, %v4713_v27 }
 0x30c   :  { %v2627_v58 = vrot.slane %v2619_v37, %v4680_v8  ;;  %v4362_v10 = vpack.i.bf16 %v3663_v59, %v3239_v57  ;;  %v2959_v23 = vcombine.low %v5926_v48, %v5951_v11  ;;  %v3646_v24 = vrot.slane %v3632_v46, %v4713_v27 }
 0x30d   :  { %v5958_v15 = vpop.permute.xlu1 %2939  ;;  %v4407_v22 = vpack.i.bf16 %v2858_v36, %v2442_v51  ;;  %v2144_v7 = vcombine.high %v5799_v14, %v5802_v33 }
 0x30e   :  { %v2635_v35 = vcombine.low %v2611_v26, %v2627_v58  ;;  %v2636_v44 = vcombine.high %v2611_v26, %v2627_v58  ;;  %4363 = vrot.lane.b32.xlu0 %v4362_v10, %s4631_s28  ;;  %v2180_v58 = vcombine.high %v6851_v45, %v6850_v2  ;;  %v5988_v26 = vrot.slane %v2195_v34, %v4713_v27 }
 0x30f   :  { %v5973_v63 = vpop.permute.xlu0 %3153  ;;  %v5991_v20 = vrot.slane %v2959_v23, %v4680_v8  ;;  %v3222_v2 = vrot.slane %v3208_v29, %v4713_v27  ;;  %v3616_v45 = vcombine.high %v5872_v40, %v5896_v19  ;;  %v6007_v23 = vrot.slane %v2164_v0, %v4680_v8 }
 0x310   :  { %v2650_v18 = vrot.slane %v2636_v44, %v4713_v27  ;;  %v5982_v43 = vrot.slane %v2635_v35, %v4713_v27  ;;  %v3407_v35 = vcombine.low %v5965_v3, %v5968_v60  ;;  %v2219_v34 = vcombine.high %v5988_v26, %v6845_v1 }
 0x311   :  { %v5984_v55 = vpop.permute.xlu1 %2947  ;;  %v4382_v59 = vpack.i.bf16 %v3646_v24, %v3222_v2  ;;  %v2194_v40 = vrot.slane %v2180_v58, %v4680_v8  ;;  %v3664_v57 = vcombine.high %v3646_v24, %v6845_v1  ;;  %v3600_v10 = vcombine.high %v5848_v9, %v5867_v30 }
 0x312   :  { %v2975_v32 = vcombine.low %v5958_v15, %v5984_v55  ;;  %v4397_v44 = vpack.i.bf16 %v2650_v18, %v2210_v39  ;;  %4373 = vrot.lane.b32.xlu0 %v4372_v5, %s4630_s27  ;;  %v2659_v47 = vcombine.high %v5982_v43, %v6845_v1  ;;  %v2802_v29 = vcombine.high %v2798_v54, %v6845_v1 }
 0x313   :  { %v6009_v37 = vpop.permute.xlu0 %3161  ;;  %v6028_v0 = vrot.slane %v3407_v35, %v4713_v27  ;;  %v3176_v58 = vcombine.high %v5805_v42, %v5830_v4  ;;  %v6033_v5 = vrot.slane %v3616_v45, %v4680_v8  ;;  %v3240_v52 = vcombine.high %v3222_v2, %v6845_v1 }
 0x314   :  { %v6003_v46 = vrot.slane %v2975_v32, %v4680_v8  ;;  %4398 = vrot.lane.b32.xlu1 %v4397_v44, %s4634_s4  ;;  %v2604_v9 = vcombine.high %v5884_v61, %v5907_v38  ;;  %v2620_v54 = vcombine.high %v5916_v41, %v5939_v49  ;;  %v4392_v42 = vpack.i.bf16 %v2659_v47, %v2219_v34 }
 0x315   :  { %v6011_v25 = vpop.permute.xlu1 %3157  ;;  %v4417_v4 = vpack.i.bf16 %v3664_v57, %v3240_v52  ;;  %v2220_v32 = vcombine.high %v2210_v39, %v6845_v1  ;;  %v2660_v44 = vcombine.high %v2650_v18, %v6845_v1  ;;  %v6052_v35 = vrot.slane %v3192_v31, %v4680_v8 }
 0x316   :  { %v2991_v19 = vcombine.low %v5991_v20, %v6003_v46  ;;  %4383 = vrot.lane.b32.xlu0 %v4382_v59, %s4629_s26  ;;  %v6055_v61 = vrot.slane %v3600_v10, %v4680_v8  ;;  %v3439_v41 = vcombine.high %v6028_v0, %v6845_v1  ;;  %v2861_v39 = vcombine.high %v2858_v36, %v6845_v1 }
 0x317   :  { %v6057_v38 = vpop.permute.xlu0 %3577  ;;  %v2584_v49 = vcombine.high %v5833_v62, %v5823_v16  ;;  %v6066_v14 = vrot.slane %v3176_v58, %v4680_v8  ;;  %v4402_v33 = vpack.i.bf16 %v2802_v29, %v2386_v56  ;;  %v2445_v18 = vcombine.high %v2442_v51, %v6845_v1 }
 0x318   :  { %4408 = vrot.lane.b32.xlu1 %v4407_v22, %s4638_s8  ;;  %v6043_v30 = vrot.slane %v2991_v19, %v4713_v27  ;;  %v3647_v2 = vcombine.low %v6055_v61, %v6033_v5  ;;  %v2618_v45 = vrot.slane %v2604_v9, %v4680_v8  ;;  %v2634_v59 = vrot.slane %v2620_v54, %v4680_v8 }
 0x319   :  { %v6045_v24 = vpop.permute.xlu1 %3165  ;;  %v4427_v62 = vpack.i.bf16 %v2660_v44, %v2220_v32  ;;  %v3223_v36 = vcombine.low %v6066_v14, %v6052_v35  ;;  %v2158_v51 = vrot.slane %v2144_v7, %v4713_v27  ;;  %v2598_v47 = vrot.slane %v2584_v49, %v4713_v27 }
 0x31a   :  { %4393 = vrot.lane.b32.xlu0 %v4392_v42, %s4637_s7  ;;  %v3023_v16 = vcombine.high %v6043_v30, %v6845_v1  ;;  %v2211_v19 = vcombine.low %v6007_v23, %v2194_v40  ;;  %v2651_v22 = vcombine.low %v2618_v45, %v2634_v59  ;;  %v4437_v29 = vpack.i.bf16 %v2861_v39, %v2445_v18 }
 0x31b   :  { %v6085_v57 = vpop.permute.xlu0 %3585  ;;  %v3655_v58 = vrot.slane %v3647_v2, %v4713_v27  ;;  %v3243_v52 = vcombine.low %v5973_v63, %v6009_v37  ;;  %v3259_v56 = vcombine.low %v6011_v25, %v6045_v24  ;;  %v3231_v40 = vrot.slane %v3223_v36, %v4713_v27 }
 0x31c   :  { %4418 = vrot.lane.b32.xlu1 %v4417_v4, %s4636_s6  ;;  %v4412_v10 = vpack.i.bf16 %v3439_v41, %v3023_v16  ;;  %v3667_v9 = vcombine.low %v6057_v38, %v6085_v57  ;;  %v3376_v54 = vcombine.high %v6854_v17, %v5512_v53  ;;  %v3392_v42 = vcombine.high %v6856_v28, %v6855_v6 }
 0x31d   :  { %v6074_v34 = vpop.permute.xlu1 %3581  ;;  %v2218_v4 = vrot.slane %v2211_v19, %v4713_v27  ;;  %v3408_v32 = vcombine.high %v5965_v3, %v5968_v60  ;;  %v2992_v44 = vcombine.high %v5991_v20, %v6003_v46  ;;  %v4422_v7 = vpack.i.bf16 %v2598_v47, %v2158_v51 }
 0x31e   :  { %4403 = vrot.lane.b32.xlu0 %v4402_v33, %s4635_s5  ;;  %v4447_v41 = vpack.i.bf16 %v3655_v58, %v3231_v40  ;;  %v2658_v39 = vrot.slane %v2651_v22, %v4713_v27  ;;  %v3251_v49 = vrot.slane %v3243_v52, %v4680_v8  ;;  %v3267_v53 = vrot.slane %v3259_v56, %v4680_v8  ;;  %v6858_v56 = vld [vmem:[#allocation15_spill] sm:$0xff] }
 0x31f   :  { %v3675_v17 = vrot.slane %v3667_v9, %v4680_v8  ;;  %v6117_v28 = vrot.slane %v3376_v54, %v4680_v8  ;;  %v6120_v3 = vrot.slane %v3392_v42, %v4680_v8  ;;  %v3422_v60 = vrot.slane %v3408_v32, %v4713_v27  ;;  %v6126_v46 = vpop.permute.xlu0 %2937 }
 0x320   :  { %4428 = vrot.lane.b32.xlu1 %v4427_v62, %s4639_s9  ;;  %v2960_v20 = vcombine.high %v5926_v48, %v5951_v11  ;;  %v4432_v18 = vpack.i.bf16 %v5860_v13, %v5854_v12  ;;  %v3006_v2 = vrot.slane %v2992_v44, %v4713_v27  ;;  %v3665_v45 = vcombine.high %v3655_v58, %v6845_v1 }
 0x321   :  { %v6087_v31 = vpop.permute.xlu1 %3589  ;;  %v2976_v59 = vcombine.high %v5958_v15, %v5984_v55  ;;  %v3276_v16 = vcombine.high %v3251_v49, %v3267_v53  ;;  %v4457_v36 = vpack.i.bf16 %v2658_v39, %v2218_v4  ;;  %v3241_v48 = vcombine.high %v3231_v40, %v6845_v1 }
 0x322   :  { %v3683_v23 = vcombine.low %v6074_v34, %v6087_v31  ;;  %4413 = vrot.lane.b32.xlu0 %v4412_v10, %s4631_s28  ;;  %v3423_v11 = vcombine.low %v6117_v28, %v6120_v3  ;;  %v2162_v12 = vcombine.high %v2158_v51, %v6845_v1  ;;  %v2602_v13 = vcombine.high %v2598_v47, %v6845_v1  ;;  %v6857_v47 = vld [vmem:[#allocation16_spill] sm:$0xff] }
 0x323   :  { %v3275_v19 = vcombine.low %v3251_v49, %v3267_v53  ;;  %v4442_v10 = vpack.i.bf16 %v3422_v60, %v3006_v2  ;;  %v4467_v15 = vpack.i.bf16 %v3665_v45, %v3241_v48  ;;  %v6144_v55 = vrot.slane %v2960_v20, %v4680_v8 }
 0x324   :  { %4438 = vrot.lane.b32.xlu1 %v4437_v29, %s4641_s11  ;;  %v3691_v6 = vrot.slane %v3683_v23, %v4680_v8  ;;  %v6147_v29 = vrot.slane %v2976_v59, %v4680_v8  ;;  %v6150_v58 = vrot.slane %v3276_v16, %v4713_v27  ;;  %v3443_v51 = vcombine.low %v5552_v21, %v5560_v50  ;;  %v6159_v23 = vpop.permute.xlu0 %2945 }
 0x325   :  { %v6128_v33 = vpop.permute.xlu1 %2941  ;;  %v3459_v9 = vcombine.low %v6858_v56, %v6857_v47  ;;  %v3440_v54 = vcombine.high %v3422_v60, %v6845_v1  ;;  %v2221_v42 = vcombine.high %v2218_v4, %v6845_v1  ;;  %v3648_v32 = vcombine.high %v6055_v61, %v6033_v5 }
 0x326   :  { %4423 = vrot.lane.b32.xlu0 %v4422_v7, %s4630_s27  ;;  %v3700_v62 = vcombine.high %v3675_v17, %v3691_v6  ;;  %v3699_v22 = vcombine.low %v3675_v17, %v3691_v6  ;;  %v3027_v44 = vcombine.low %v6126_v46, %v6159_v23  ;;  %v4452_v7 = vpack.i.bf16 %v2602_v13, %v2162_v12 }
 0x327   :  { %v3024_v4 = vcombine.high %v3006_v2, %v6845_v1  ;;  %v2661_v53 = vcombine.high %v2658_v39, %v6845_v1  ;;  %v3007_v5 = vcombine.low %v6144_v55, %v6147_v29  ;;  %v3451_v17 = vrot.slane %v3443_v51, %v4680_v8 }
 0x328   :  { %4448 = vrot.lane.b32.xlu1 %v4447_v41, %s4628_s0  ;;  %v6153_v52 = vrot.slane %v3700_v62, %v4713_v27  ;;  %v6174_v41 = vrot.slane %v3275_v19, %v4713_v27  ;;  %v6177_v49 = vrot.slane %v3699_v22, %v4713_v27  ;;  %v3467_v6 = vrot.slane %v3459_v9, %v4680_v8  ;;  %v6223_v22 = vpop.permute.xlu0 %1760 }
 0x329   :  { %v6161_v40 = vpop.permute.xlu1 %2949  ;;  %v3224_v60 = vcombine.high %v6066_v14, %v6052_v35  ;;  %v3431_v20 = vrot.slane %v3423_v11, %v4713_v27  ;;  %v3244_v39 = vcombine.high %v5973_v63, %v6009_v37  ;;  %v6197_v45 = vrot.slane %v3648_v32, %v4713_v27 }
 0x32a   :  { %4433 = vrot.lane.b32.xlu0 %v4432_v18, %s4632_s29  ;;  %v3043_v21 = vcombine.low %v6128_v33, %v6161_v40  ;;  %v4477_v61 = vpack.i.bf16 %v6153_v52, %v6150_v58  ;;  %v3035_v18 = vrot.slane %v3027_v44, %v4680_v8  ;;  %v4462_v59 = vpack.i.bf16 %v3440_v54, %v3024_v4 }
 0x32b   :  { %v4487_v16 = vpack.i.bf16 %v2661_v53, %v2221_v42  ;;  %v3299_v35 = vcombine.high %v6174_v41, %v6845_v1  ;;  %v3723_v14 = vcombine.high %v6177_v49, %v6845_v1  ;;  %v3015_v62 = vrot.slane %v3007_v5, %v4713_v27 }
 0x32c   :  { %4458 = vrot.lane.b32.xlu1 %v4457_v36, %s4638_s8  ;;  %v3051_v2 = vrot.slane %v3043_v21, %v4680_v8  ;;  %v3260_v63 = vcombine.high %v6011_v25, %v6045_v24  ;;  %v3668_v37 = vcombine.high %v6057_v38, %v6085_v57  ;;  %v3684_v36 = vcombine.high %v6074_v34, %v6087_v31  ;;  %v6232_v21 = vpop.permute.xlu0 %3795 }
 0x32d   :  { %v6212_v48 = vrot.slane %v3224_v60, %v4713_v27  ;;  %v3476_v12 = vcombine.high %v3451_v17, %v3467_v6  ;;  %v3258_v13 = vrot.slane %v3244_v39, %v4680_v8  ;;  %v4472_v19 = vpack.i.bf16 %v3723_v14, %v3299_v35 }
 0x32e   :  { %4443 = vrot.lane.b32.xlu0 %v4442_v10, %s4629_s26  ;;  %v3060_v11 = vcombine.high %v3035_v18, %v3051_v2  ;;  %v3441_v24 = vcombine.high %v3431_v20, %v6845_v1  ;;  %v3274_v38 = vrot.slane %v3260_v63, %v4680_v8  ;;  %v3682_v34 = vrot.slane %v3668_v37, %v4680_v8 }
 0x32f   :  { %v4497_v25 = vpack.i.bf16 %v6197_v45, %v6212_v48  ;;  %v3698_v57 = vrot.slane %v3684_v36, %v4680_v8  ;;  %v3025_v31 = vcombine.high %v3015_v62, %v6845_v1  ;;  %v3475_v10 = vcombine.low %v3451_v17, %v3467_v6 }
 0x330   :  { %4468 = vrot.lane.b32.xlu1 %v4467_v15, %s4633_s30  ;;  %v3074_v15 = vrot.slane %v3060_v11, %v4713_v27  ;;  %v3490_v51 = vrot.slane %v3476_v12, %v4713_v27  ;;  %v3059_v9 = vcombine.low %v3035_v18, %v3051_v2  ;;  %v4482_v54 = vpack.i.bf16 %v5982_v43, %v5988_v26  ;;  %v6244_v26 = vpop.permute.xlu1 %3791 }
 0x331   :  { %v3291_v42 = vcombine.low %v3258_v13, %v3274_v38  ;;  %v3715_v32 = vcombine.low %v3682_v34, %v3698_v57  ;;  %v4507_v44 = vpack.i.bf16 %v3441_v24, %v3025_v31  ;;  %v3460_v53 = vcombine.high %v6858_v56, %v6857_v47 }
 0x332   :  { %4453 = vrot.lane.b32.xlu0 %v4452_v7, %s4635_s5  ;;  %v4573_v7 = vld [vmem:[#allocation2 + $0x4a] sm:$0x3f]  ;;  %v4517_v5 = vpack.i.bf16 %v3490_v51, %v3074_v15  ;;  %v6242_v43 = vrot.slane %v3059_v9, %v4713_v27  ;;  %v4492_v17 = vpack.i.bf16 %v3431_v20, %v3015_v62  ;;  %v3300_v6 = vcombine.high %v6150_v58, %v6845_v1 }
 0x333   :  { %v3444_v4 = vcombine.high %v4573_v7, %v5560_v50  ;;  %v3724_v50 = vcombine.high %v6153_v52, %v6845_v1  ;;  %v3298_v47 = vrot.slane %v3291_v42, %v4713_v27  ;;  %v3722_v56 = vrot.slane %v3715_v32, %v4713_v27  ;;  %v6861_v9 = vld [vmem:[#allocation17_spill] sm:$0xff] }
 0x334   :  { %4478 = vrot.lane.b32.xlu1 %v4477_v61, %s4634_s4  ;;  %v6239_v61 = vrot.slane %v3475_v10, %v4713_v27  ;;  %v3028_v60 = vcombine.high %v6126_v46, %v6159_v23  ;;  %v3044_v39 = vcombine.high %v6128_v33, %v6161_v40  ;;  %v3474_v18 = vrot.slane %v3460_v53, %v4680_v8  ;;  %v6265_v23 = vpop.permute.xlu0 %3803  ;;  %v3800_v35 = vpop.permute.xlu1 %3799 }
 0x335   :  { %v3458_v20 = vrot.slane %v3444_v4, %v4680_v8  ;;  %v4502_v58 = vpack.i.bf16 %v3724_v50, %v3300_v6  ;;  %v3083_v52 = vcombine.high %v6242_v43, %v6845_v1  ;;  %v3500_v46 = vcombine.high %v3490_v51, %v6845_v1  ;;  %v6860_v51 = vld [vmem:[#allocation20_spill] sm:$0xff] }
 0x336   :  { %4463 = vrot.lane.b32.xlu0 %v4462_v59, %s4636_s6  ;;  %v3499_v2 = vcombine.high %v6239_v61, %v6845_v1  ;;  %v3042_v33 = vrot.slane %v3028_v60, %v4680_v8  ;;  %v3058_v40 = vrot.slane %v3044_v39, %v4680_v8  ;;  %v4527_v59 = vpack.i.bf16 %v3722_v56, %v3298_v47 }
 0x337   :  { %v3815_v14 = vcombine.low %v6244_v26, %v3800_v35  ;;  %v3831_v62 = vcombine.low %v6232_v21, %v6265_v23  ;;  %v3424_v63 = vcombine.high %v6117_v28, %v6120_v3  ;;  %v3008_v37 = vcombine.high %v6144_v55, %v6147_v29  ;;  %v6859_v55 = vld [vmem:[#allocation18_spill] sm:$0xff] }
 0x338   :  { %4488 = vrot.lane.b32.xlu1 %v4487_v16, %s4641_s11  ;;  %v3084_v16 = vcombine.high %v3074_v15, %v6845_v1  ;;  %v4512_v36 = vpack.i.bf16 %v3499_v2, %v3083_v52  ;;  %v3666_v11 = vcombine.high %v6197_v45, %v6845_v1  ;;  %v3491_v12 = vcombine.low %v3458_v20, %v3474_v18  ;;  %v6294_v10 = vpop.permute.xlu1 %1762  ;;  %v6312_v50 = vpop.permute.xlu0 %3793 }
 0x339   :  { %v3075_v13 = vcombine.low %v3042_v33, %v3058_v40  ;;  %v3725_v24 = vcombine.high %v3722_v56, %v6845_v1  ;;  %v3242_v38 = vcombine.high %v6212_v48, %v6845_v1  ;;  %v3823_v28 = vrot.slane %v3815_v14, %v4680_v8  ;;  %v6864_v33 = vld [vmem:[#allocation19_spill] sm:$0xff] }
 0x33a   :  { %4473 = vrot.lane.b32.xlu0 %v4472_v19, %s4637_s7  ;;  %v4537_v19 = vpack.i.bf16 %v3500_v46, %v3084_v16  ;;  %v3839_v3 = vrot.slane %v3831_v62, %v4680_v8  ;;  %v1788_v29 = vcombine.low %v6859_v55, %v6223_v22  ;;  %v3022_v34 = vrot.slane %v3008_v37, %v4713_v27  ;;  %v6863_v46 = vld [vmem:[#allocation22_spill] sm:$0xff] }
 0x33b   :  { %v4522_v45 = vpack.i.bf16 %v3666_v11, %v3242_v38  ;;  %v3438_v57 = vrot.slane %v3424_v63, %v4713_v27  ;;  %v3082_v31 = vrot.slane %v3075_v13, %v4713_v27  ;;  %v3498_v48 = vrot.slane %v3491_v12, %v4713_v27 }
 0x33c   :  { %4498 = vrot.lane.b32.xlu1 %v4497_v25, %s4630_s27  ;;  %v3301_v25 = vcombine.high %v3298_v47, %v6845_v1  ;;  %v3847_v42 = vcombine.low %v3823_v28, %v3839_v3  ;;  %v1796_v32 = vrot.slane %v1788_v29, %v4680_v8  ;;  %v6302_v4 = vpop.permute.xlu1 %3797  ;;  %v4542_v6 = vpack.i.bf16 %v6177_v49, %v6174_v41  ;;  %v6333_v2 = vpop.permute.xlu0 %3801 }
 0x33d   :  { %v4557_v7 = vpack.i.bf16 %v3498_v48, %v3082_v31  ;;  %v3026_v47 = vcombine.high %v3022_v34, %v6845_v1  ;;  %v3442_v56 = vcombine.high %v3438_v57, %v6845_v1  ;;  %v4562_v60 = vpack.i.bf16 %v6239_v61, %v6242_v43  ;;  %v6862_v61 = vld [vmem:[#allocation21_spill] sm:$0xff] }
 0x33e   :  { %4483 = vrot.lane.b32.xlu0 %v4482_v54, %s4632_s29  ;;  %v4547_v15 = vpack.i.bf16 %v3725_v24, %v3301_v25  ;;  %v1772_v54 = vcombine.low %v6861_v9, %v6860_v51  ;;  %v3816_v49 = vcombine.high %v6244_v26, %v3800_v35  ;;  %v3832_v18 = vcombine.high %v6232_v21, %v6265_v23 }
 0x33f   :  { %v1856_v43 = vcombine.low %v6862_v61, %v6294_v10  ;;  %v3848_v52 = vcombine.high %v3823_v28, %v3839_v3  ;;  %v1840_v40 = vcombine.low %v6864_v33, %v6863_v46  ;;  %v3085_v16 = vcombine.high %v3082_v31, %v6845_v1 }
 0x340   :  { %4508 = vrot.lane.b32.xlu1 %v4507_v44, %s4633_s30  ;;  %v4532_v44 = vpack.i.bf16 %v3438_v57, %v3022_v34  ;;  %v1780_v53 = vrot.slane %v1772_v54, %v4680_v8  ;;  %v6320_v39 = vpop.permute.xlu1 %3805  ;;  %v6340_v26 = vrot.slane %v3816_v49, %v4680_v8  ;;  %v6343_v21 = vrot.slane %v3832_v18, %v4680_v8  ;;  %v6865_v57 = vld [vmem:[#allocation23_spill] sm:$0xff] }
 0x341   :  { %v1864_v35 = vrot.slane %v1856_v43, %v4680_v8  ;;  %v3862_v62 = vrot.slane %v3848_v52, %v4713_v27  ;;  %v1848_v63 = vrot.slane %v1840_v40, %v4680_v8  ;;  %v1789_v37 = vcombine.high %v6859_v55, %v6223_v22 }
 0x342   :  { %4493 = vrot.lane.b32.xlu0 %v4492_v17, %s4628_s0  ;;  %v1804_v17 = vcombine.low %v1780_v53, %v1796_v32  ;;  %v1773_v11 = vcombine.high %v6861_v9, %v6860_v51  ;;  %v3863_v12 = vcombine.low %v6340_v26, %v6343_v21  ;;  %v3883_v9 = vcombine.low %v6312_v50, %v6333_v2 }
 0x343   :  { %v1872_v25 = vcombine.low %v1848_v63, %v1864_v35  ;;  %v3880_v3 = vcombine.high %v3862_v62, %v6845_v1  ;;  %v6362_v34 = vrot.slane %v1789_v37, %v4680_v8  ;;  %v1873_v40 = vcombine.high %v1848_v63, %v1864_v35 }
 0x344   :  { %4518 = vrot.lane.b32.xlu1 %v4517_v5, %s4634_s4  ;;  %v6307_v5 = vrot.slane %v3847_v42, %v4713_v27  ;;  %v6325_v41 = vrot.slane %v1804_v17, %v4713_v27  ;;  %v3891_v49 = vrot.slane %v3883_v9, %v4680_v8  ;;  %v1841_v63 = vcombine.high %v6864_v33, %v6863_v46 }
 0x345   :  { %v1887_v35 = vrot.slane %v1873_v40, %v4713_v27 }
 0x346   :  { %4503 = vrot.lane.b32.xlu0 %v4502_v58, %s4639_s9  ;;  %v3879_v20 = vcombine.high %v6307_v5, %v6845_v1  ;;  %v4552_v58 = vpack.i.bf16 %v3442_v56, %v3026_v47  ;;  %v1836_v23 = vcombine.high %v6325_v41, %v6845_v1  ;;  %v1787_v47 = vrot.slane %v1773_v11, %v4680_v8 }
 0x347   :  { %v1855_v46 = vrot.slane %v1841_v63, %v4680_v8  ;;  %v30_v63 = vld [vmem:[%s6784_s2] sm:$0xff] }
 0x348   :  { %4528 = vrot.lane.b32.xlu1 %v4527_v59, %s4638_s8  ;;  %v3501_v59 = vcombine.high %v3498_v48, %v6845_v1  ;;  %v1820_v56 = vcombine.low %v1787_v47, %v6362_v34  ;;  %v1821_v33 = vcombine.high %v1787_v47, %v6362_v34 }
 0x34a   :  { %4513 = vrot.lane.b32.xlu0 %v4512_v36, %s4637_s7  ;;  %v1805_v36 = vcombine.high %v1780_v53, %v1796_v32  ;;  %v3871_v32 = vrot.slane %v3863_v12, %v4713_v27  ;;  %v1828_v52 = vrot.slane %v1820_v56, %v4713_v27  ;;  %v4642_v56 = vmov 0  }
 0x34b   :  { %4572 = vset.pattern.permute.xlu0 %v4642_v56 }
 0x34c   :  { %4538 = vrot.lane.b32.xlu1 %v4537_v19, %s4639_s9  ;;  %v4567_v19 = vpack.i.bf16 %v3501_v59, %v3085_v16  ;;  %v1819_v51 = vrot.slane %v1805_v36, %v4713_v27  ;;  %v1838_v37 = vcombine.high %v1828_v52, %v6845_v1  ;;  %v1857_v36 = vcombine.high %v6862_v61, %v6294_v10 }
 0x34d   :  { %v3884_v10 = vcombine.high %v6312_v50, %v6333_v2 }
 0x34e   :  { %4523 = vrot.lane.b32.xlu0 %v4522_v45, %s4635_s5 }
 0x34f   :  { %v3898_v50 = vrot.slane %v3884_v10, %v4680_v8 }
 0x350   :  { %4548 = vrot.lane.b32.xlu1 %v4547_v15, %s4641_s11  ;;  %v6866_v15 = vld [vmem:[#allocation24_spill] sm:$0xff] }
 0x352   :  { %4533 = vrot.lane.b32.xlu0 %v4532_v44, %s4630_s27  ;;  %v6376_v44 = vrot.slane %v1872_v25, %v4713_v27  ;;  %v1897_v25 = vcombine.high %v1887_v35, %v6845_v1 }
 0x354   :  { %4558 = vrot.lane.b32.xlu1 %v4557_v7, %s4638_s8  ;;  %v3899_v7 = vcombine.low %v6302_v4, %v6320_v39 }
 0x356   :  { %4543 = vrot.lane.b32.xlu0 %v4542_v6, %s4632_s29 }
 0x358   :  { %4563 = vrot.lane.b32.xlu1 %v4562_v60, %s4632_s29  ;;  %v1837_v60 = vcombine.high %v1819_v51, %v6845_v1 }
 0x35a   :  { %4553 = vrot.lane.b32.xlu0 %v4552_v58, %s4635_s5  ;;  %v1896_v58 = vcombine.high %v6376_v44, %v6845_v1 }
 0x35c   :  { %3943 = vrot.lane.b32.xlu1 %v3879_v20, %s4631_s28  ;;  %v3907_v20 = vrot.slane %v3899_v7, %v4680_v8 }
 0x35e   :  { %v4319_v14 = vpop.permute.xlu1 %4318  ;;  %1900 = vrot.lane.b32.xlu0 %v1836_v23, %s4631_s28  ;;  %v3916_v59 = vcombine.high %v3891_v49, %v3907_v20  ;;  %v3881_v23 = vcombine.high %v3871_v32, %v6845_v1 }
 0x35f   :  { %v4321_v29 = vunpack.i.h.bf16 %v4319_v14  ;;  %v4320_v45 = vunpack.i.l.bf16 %v4319_v14  ;;  %v3915_v14 = vcombine.low %v3891_v49, %v3907_v20  ;;  %v6868_v49 = vld [vmem:[#allocation10_spill] sm:$0xff] }
 0x360   :  { %3947 = vrot.lane.b32.xlu1 %v3862_v62, %s4629_s26  ;;  %v4314_v13 = vpop.permute.xlu0 %4313  ;;  %v3930_v11 = vrot.slane %v3916_v59, %v4713_v27 }
 0x361   :  { %v4316_v24 = vunpack.i.h.bf16 %v4314_v13  ;;  %v4315_v38 = vunpack.i.l.bf16 %v4314_v13  ;;  %v3923_v12 = vrot.slane %v3915_v14, %v4713_v27  ;;  %v1871_v13 = vrot.slane %v1857_v36, %v4680_v8 }
 0x362   :  { %v4329_v28 = vpop.permute.xlu1 %4328  ;;  %4568 = vrot.lane.b32.xlu0 %v4567_v19, %s4641_s11  ;;  %v3900_v19 = vcombine.high %v6302_v4, %v6320_v39  ;;  %v3940_v2 = vcombine.high %v3930_v11, %v6845_v1 }
 0x363   :  { %v4331_v22 = vunpack.i.h.bf16 %v4329_v28  ;;  %v4330_v55 = vunpack.i.l.bf16 %v4329_v28  ;;  %v2914_v31 = vsel %vm218_vm0, %v6865_v57, %v4316_v24  ;;  %v2498_v48 = vsel %vm218_vm0, %v6866_v15, %v4315_v38 }
 0x364   :  { %3951 = vrot.lane.b32.xlu1 %v3880_v3, %s4636_s6  ;;  %v2499_v54 = vsel %vm220_vm1, %v2498_v48, %v4320_v45  ;;  %v2915_v42 = vsel %vm220_vm1, %v2914_v31, %v4321_v29  ;;  %v3939_v38 = vcombine.high %v3923_v12, %v6845_v1  ;;  %v1888_v4 = vcombine.low %v1855_v46, %v1871_v13 }
 0x365   :  { %v6381_v53 = vsel %vm222_vm2, %v2499_v54, %v4330_v55  ;;  %v6384_v17 = vsel %vm222_vm2, %v2915_v42, %v4331_v22  ;;  %v3914_v39 = vrot.slane %v3900_v19, %v4680_v8  ;;  %v3864_v3 = vcombine.high %v6340_v26, %v6343_v21 }
 0x366   :  { %v6386_v6 = vpop.permute.xlu1 %4338  ;;  %1904 = vrot.lane.b32.xlu0 %v1819_v51, %s4629_s26  ;;  %v1835_v45 = vrot.slane %v1821_v33, %v4713_v27  ;;  %v1895_v55 = vrot.slane %v1888_v4, %v4713_v27 }
 0x367   :  { %v3931_v22 = vcombine.low %v3898_v50, %v3914_v39  ;;  %v3878_v34 = vrot.slane %v3864_v3, %v4713_v27  ;;  %v4340_v46 = vunpack.i.l.bf16 %v6386_v6 }
 0x368   :  { %3955 = vrot.lane.b32.xlu1 %v3871_v32, %s4628_s0  ;;  %v6399_v43 = vpop.permute.xlu0 %4323  ;;  %v1839_v21 = vcombine.high %v1835_v45, %v6845_v1  ;;  %v1898_v48 = vcombine.high %v1895_v55, %v6845_v1 }
 0x369   :  { %v3938_v31 = vrot.slane %v3931_v22, %v4713_v27  ;;  %v3882_v27 = vcombine.high %v3878_v34, %v6845_v1  ;;  %v4326_v33 = vunpack.i.h.bf16 %v6399_v43 }
 0x36a   :  { %v6395_v18 = vpop.permute.xlu1 %4348  ;;  %1908 = vrot.lane.b32.xlu0 %v1837_v60, %s4636_s6  ;;  %v6867_v60 = vld [vmem:[#allocation8_spill] sm:$0xff] }
 0x36b   :  { %v3941_v47 = vcombine.high %v3938_v31, %v6845_v1  ;;  %v4351_v39 = vunpack.i.h.bf16 %v6395_v18  ;;  %v4350_v50 = vunpack.i.l.bf16 %v6395_v18 }
 0x36c   :  { %1932 = vrot.lane.b32.xlu1 %v1896_v58, %s4637_s7  ;;  %v6409_v62 = vpop.permute.xlu0 %4333 }
 0x36d   :  { %v4335_v3 = vunpack.i.l.bf16 %v6409_v62 }
 0x36e   :  { %1912 = vrot.lane.b32.xlu0 %v1828_v52, %s4628_s0  ;;  %v6406_v16 = vpop.permute.xlu1 %4358 }
 0x36f   :  { %v4360_v22 = vunpack.i.l.bf16 %v6406_v16 }
 0x370   :  { %3959 = vrot.lane.b32.xlu1 %v3881_v23, %s4633_s30  ;;  %v6429_v24 = vpop.permute.xlu0 %4343 }
 0x372   :  { %1916 = vrot.lane.b32.xlu0 %v1838_v37, %s4633_s30  ;;  %v6426_v61 = vpop.permute.xlu1 %4368 }
 0x373   :  { %v4370_v56 = vunpack.i.l.bf16 %v6426_v61 }
 0x374   :  { %3979 = vrot.lane.b32.xlu1 %v3930_v11, %s4634_s4  ;;  %v6445_v29 = vpop.permute.xlu0 %4353 }
 0x375   :  { %v4355_v4 = vunpack.i.l.bf16 %v6445_v29 }
 0x376   :  { %1936 = vrot.lane.b32.xlu0 %v1887_v35, %s4634_s4  ;;  %v6440_v28 = vpop.permute.xlu1 %4378 }
 0x378   :  { %1940 = vrot.lane.b32.xlu1 %v1897_v25, %s4639_s9  ;;  %v4341_v25 = vunpack.i.h.bf16 %v6386_v6  ;;  %v4361_v6 = vunpack.i.h.bf16 %v6406_v16 }
 0x37a   :  { %3975 = vrot.lane.b32.xlu0 %v3939_v38, %s4637_s7  ;;  %v6452_v57 = vpop.permute.xlu1 %4388  ;;  %v4356_v38 = vunpack.i.h.bf16 %v6445_v29  ;;  %v2917_v18 = vsel %vm224_vm3, %v6384_v17, %v4341_v25 }
 0x37c   :  { %3983 = vrot.lane.b32.xlu1 %v3940_v2, %s4639_s9  ;;  %v4336_v2 = vunpack.i.h.bf16 %v6409_v62  ;;  %v4380_v62 = vunpack.i.l.bf16 %v6440_v28 }
 0x37e   :  { %1920 = vrot.lane.b32.xlu0 %v1835_v45, %s4630_s27 }
 0x380   :  { %1944 = vrot.lane.b32.xlu1 %v1895_v55, %s4638_s8  ;;  %v4364_v8 = vpop.permute.xlu0 %4363  ;;  %v4345_v55 = vunpack.i.l.bf16 %v6429_v24 }
 0x381   :  { %v4366_v51 = vunpack.i.h.bf16 %v4364_v8  ;;  %v4365_v9 = vunpack.i.l.bf16 %v4364_v8 }
 0x382   :  { %3963 = vrot.lane.b32.xlu0 %v3878_v34, %s4630_s27  ;;  %v2501_v34 = vsel %vm224_vm3, %v6381_v53, %v4340_v46  ;;  %v2507_v53 = vsel %vm236_vm7, %v4355_v4, %v4360_v22 }
 0x383   :  { %v3778_v20 = vsel %vm218_vm0, %v6867_v60, %v4366_v51  ;;  %v3354_v58 = vsel %vm218_vm0, %v6868_v49, %v4365_v9  ;;  %v6870_v51 = vld [vmem:[#allocation25_spill] sm:$0xff]  ;;  %v2502_v17 = vsel %vm226_vm4, %v2501_v34, %v4350_v50  ;;  %v2918_v9 = vsel %vm226_vm4, %v2917_v18, %v4351_v39 }
 0x384   :  { %3987 = vrot.lane.b32.xlu1 %v3938_v31, %s4638_s8  ;;  %v6457_v26 = vpop.permute.xlu0 %4373  ;;  %v4381_v31 = vunpack.i.h.bf16 %v6440_v28 }
 0x386   :  { %v6460_v15 = vpop.permute.xlu1 %4398  ;;  %1924 = vrot.lane.b32.xlu0 %v1839_v21, %s4635_s5  ;;  %v6869_v21 = vld [vmem:[#allocation26_spill] sm:$0xff] }
 0x388   :  { %1948 = vrot.lane.b32.xlu1 %v1898_v48, %s4641_s11  ;;  %v4384_v54 = vpop.permute.xlu0 %4383  ;;  %v2714_v48 = vsel %vm218_vm0, %v6869_v21, %v4326_v33 }
 0x389   :  { %v4386_v42 = vunpack.i.h.bf16 %v4384_v54  ;;  %v4385_v32 = vunpack.i.l.bf16 %v4384_v54  ;;  %v2715_v54 = vsel %vm220_vm1, %v2714_v48, %v4336_v2 }
 0x38a   :  { %v6466_v7 = vpop.permute.xlu1 %4408  ;;  %3967 = vrot.lane.b32.xlu0 %v3882_v27, %s4635_s5 }
 0x38b   :  { %v3355_v52 = vsel %vm220_vm1, %v3354_v58, %v4385_v32  ;;  %v3779_v40 = vsel %vm220_vm1, %v3778_v20, %v4386_v42  ;;  %v2508_v20 = vsel %vm238_vm8, %v2507_v53, %v4380_v62  ;;  %v4376_v58 = vunpack.i.h.bf16 %v6457_v26 }
 0x38c   :  { %3991 = vrot.lane.b32.xlu1 %v3941_v47, %s4641_s11  ;;  %v6477_v59 = vpop.permute.xlu0 %4393  ;;  %v4371_v47 = vunpack.i.h.bf16 %v6426_v61 }
 0x38d   :  { %v4396_v61 = vunpack.i.h.bf16 %v6477_v59  ;;  %v2919_v2 = vsel %vm228_vm5, %v2918_v9, %v4376_v58 }
 0x38e   :  { %v4419_v23 = vpop.permute.xlu1 %4418  ;;  %1928 = vrot.lane.b32.xlu0 %v6376_v44, %s4632_s29 }
 0x38f   :  { %v4421_v1 = vunpack.i.h.bf16 %v4419_v23  ;;  %v4420_v14 = vunpack.i.l.bf16 %v4419_v23  ;;  %v4390_v23 = vunpack.i.l.bf16 %v6452_v57 }
 0x390   :  { %v6487_v11 = vpop.permute.xlu0 %4403 }
 0x391   :  { %v6482_v37 = vsel %vm222_vm2, %v3355_v52, %v4420_v14  ;;  %v6485_v36 = vsel %vm222_vm2, %v3779_v40, %v4421_v1  ;;  %v4375_v52 = vunpack.i.l.bf16 %v6457_v26  ;;  %v4391_v40 = vunpack.i.h.bf16 %v6452_v57 }
 0x392   :  { %v6489_v35 = vpop.permute.xlu1 %4428  ;;  %3971 = vrot.lane.b32.xlu0 %v3923_v12, %s4632_s29  ;;  %v4325_v12 = vunpack.i.l.bf16 %v6399_v43  ;;  %v4346_v43 = vunpack.i.h.bf16 %v6429_v24  ;;  %v2923_v24 = vsel %vm236_vm7, %v4356_v38, %v4361_v6  ;;  %v4411_v1 = vunpack.i.h.bf16 %v6466_v7 }
 0x393   :  { %v2924_v49 = vsel %vm238_vm8, %v2923_v24, %v4381_v31  ;;  %v4410_v14 = vunpack.i.l.bf16 %v6466_v7  ;;  %v4400_v26 = vunpack.i.l.bf16 %v6460_v15  ;;  %v4406_v39 = vunpack.i.h.bf16 %v6487_v11 }
 0x394   :  { %v6495_v13 = vpop.permute.xlu0 %4413  ;;  %v2274_v16 = vsel %vm218_vm0, %v6870_v51, %v4325_v12  ;;  %v6545_v32 = vsel %vm222_vm2, %v2715_v54, %v4346_v43  ;;  %v4401_v12 = vunpack.i.h.bf16 %v6460_v15  ;;  %v4405_v57 = vunpack.i.l.bf16 %v6487_v11 }
 0x395   :  { %v2275_v28 = vsel %vm220_vm1, %v2274_v16, %v4335_v3  ;;  %v2503_v7 = vsel %vm228_vm5, %v2502_v17, %v4375_v52  ;;  %v4431_v3 = vunpack.i.h.bf16 %v6489_v35  ;;  %v4430_v6 = vunpack.i.l.bf16 %v6489_v35 }
 0x396   :  { %v6497_v19 = vpop.permute.xlu1 %4438  ;;  %1999 = vperm.xlu0 %4572, %v30_v63   ;;  %v6542_v42 = vsel %vm222_vm2, %v2275_v28, %v4345_v55  ;;  %v4395_v63 = vunpack.i.l.bf16 %v6477_v59  ;;  %v2925_v22 = vsel %vm240_vm11, %v2924_v49, %v4411_v1  ;;  %v2723_v11 = vsel %vm236_vm7, %v4396_v61, %v4401_v12 }
 0x397   :  { %v4441_v25 = vunpack.i.h.bf16 %v6497_v19  ;;  %v4440_v46 = vunpack.i.l.bf16 %v6497_v19  ;;  %v2509_v19 = vsel %vm240_vm11, %v2508_v20, %v4410_v14  ;;  %v2504_v31 = vsel %vm230_vm6, %v2503_v7, %v4405_v57 }
 0x398   :  { %v6499_v44 = vpop.permute.xlu0 %4423  ;;  %v2283_v55 = vsel %vm236_vm7, %v4395_v63, %v4400_v26  ;;  %v2920_v62 = vsel %vm230_vm6, %v2919_v2, %v4406_v39  ;;  %v2724_v16 = vsel %vm238_vm8, %v2723_v11, %v4431_v3  ;;  %v2717_v7 = vsel %vm224_vm3, %v6545_v32, %v4371_v47 }
 0x399   :  { %v2510_v18 = vsel %vm242_vm12, %v2509_v19, %v4440_v46  ;;  %v2926_v35 = vsel %vm242_vm12, %v2925_v22, %v4441_v25  ;;  %v2284_v51 = vsel %vm238_vm8, %v2283_v55, %v4430_v6  ;;  %v4426_v20 = vunpack.i.h.bf16 %v6499_v44 }
 0x39a   :  { %v6501_v10 = vpop.permute.xlu1 %4448  ;;  %v4010_v28 = vrot.slane %v2510_v18, 4  ;;  %v4016_v54 = vrot.slane %v2926_v35, 4  ;;  %v4425_v49 = vunpack.i.l.bf16 %v6499_v44  ;;  %v2277_v44 = vsel %vm224_vm3, %v6542_v42, %v4370_v56 }
 0x39b   :  { %v2278_v2 = vsel %vm226_vm4, %v2277_v44, %v4390_v23  ;;  %v2718_v3 = vsel %vm226_vm4, %v2717_v7, %v4391_v40  ;;  %v4450_v59 = vunpack.i.l.bf16 %v6501_v10 }
 0x39c   :  { %v6513_v45 = vpop.permute.xlu0 %4433  ;;  %v2279_v22 = vsel %vm228_vm5, %v2278_v2, %v4425_v49  ;;  %v2719_v42 = vsel %vm228_vm5, %v2718_v3, %v4426_v20 }
 0x39d   :  { %v4435_v21 = vunpack.i.l.bf16 %v6513_v45 }
 0x39e   :  { %v4459_v8 = vpop.permute.xlu1 %4458 }
 0x39f   :  { %v4461_v43 = vunpack.i.h.bf16 %v4459_v8  ;;  %v4460_v15 = vunpack.i.l.bf16 %v4459_v8  ;;  %v4436_v8 = vunpack.i.h.bf16 %v6513_v45  ;;  %v2505_v1 = vsel %vm232_vm9, %v2504_v31, %v4435_v21 }
 0x3a0   :  { %v6539_v27 = vpop.permute.xlu0 %4443  ;;  %v2506_v19 = vsel %vm234_vm10, %v2505_v1, %v4355_v4 }
 0x3a1   :  { %v2285_v17 = vsel %vm240_vm11, %v2284_v51, %v4460_v15  ;;  %v2725_v9 = vsel %vm240_vm11, %v2724_v16, %v4461_v43  ;;  %v2921_v14 = vsel %vm232_vm9, %v2920_v62, %v4436_v8  ;;  %v4009_v15 = vrot.slane %v2506_v19, 4 }
 0x3a2   :  { %v6549_v60 = vpop.permute.xlu1 %4468  ;;  %v4415_v51 = vunpack.i.l.bf16 %v6495_v13 }
 0x3a4   :  { %v4454_v33 = vpop.permute.xlu0 %4453 }
 0x3a5   :  { %v4456_v26 = vunpack.i.h.bf16 %v4454_v33  ;;  %v4455_v39 = vunpack.i.l.bf16 %v4454_v33  ;;  %v2922_v33 = vsel %vm234_vm10, %v2921_v14, %v4356_v38 }
 0x3a6   :  { %v6567_v50 = vpop.permute.xlu1 %4478  ;;  %v4015_v29 = vrot.slane %v2922_v33, 4 }
 0x3a7   :  { %v2280_v40 = vsel %vm230_vm6, %v2279_v22, %v4455_v39  ;;  %v2720_v23 = vsel %vm230_vm6, %v2719_v42, %v4456_v26 }
 0x3a8   :  { %v6581_v34 = vpop.permute.xlu0 %4463 }
 0x3a9   :  { %v4466_v20 = vunpack.i.h.bf16 %v6581_v34 }
 0x3aa   :  { %v4489_v48 = vpop.permute.xlu1 %4488 }
 0x3ab   :  { %v4491_v24 = vunpack.i.h.bf16 %v4489_v48  ;;  %v4490_v53 = vunpack.i.l.bf16 %v4489_v48  ;;  %v4416_v48 = vunpack.i.h.bf16 %v6495_v13  ;;  %v4471_v13 = vunpack.i.h.bf16 %v6549_v60 }
 0x3ac   :  { %v6595_v58 = vpop.permute.xlu0 %4473 }
 0x3ad   :  { %v2286_v45 = vsel %vm242_vm12, %v2285_v17, %v4490_v53  ;;  %v2726_v52 = vsel %vm242_vm12, %v2725_v9, %v4491_v24  ;;  %v4446_v24 = vunpack.i.h.bf16 %v6539_v27  ;;  %v4445_v53 = vunpack.i.l.bf16 %v6539_v27 }
 0x3ae   :  { %v6601_v25 = vpop.permute.xlu1 %4498  ;;  %v4032_v46 = vsel %vm1988_vm13, %v2286_v45, %v4010_v28  ;;  %v4034_v12 = vsel %vm1988_vm13, %v2726_v52, %v4016_v54  ;;  %v3554_v17 = vsel %vm218_vm0, %v6028_v0, %v4416_v48  ;;  %v3138_v9 = vsel %vm218_vm0, %v6043_v30, %v4415_v51 }
 0x3af   :  { %v4150_v57 = vpack.c.bf16 %v4034_v12, %v4032_v46  ;;  %v4470_v28 = vunpack.i.l.bf16 %v6549_v60  ;;  %v4465_v27 = vunpack.i.l.bf16 %v6581_v34  ;;  %v4476_v0 = vunpack.i.h.bf16 %v6595_v58 }
 0x3b0   :  { %v4484_v6 = vpop.permute.xlu0 %4483  ;;  %v4475_v45 = vunpack.i.l.bf16 %v6595_v58  ;;  %v4501_v30 = vunpack.i.h.bf16 %v6601_v25  ;;  %v4500_v52 = vunpack.i.l.bf16 %v6601_v25  ;;  %v3555_v1 = vsel %vm220_vm1, %v3554_v17, %v4446_v24 }
 0x3b1   :  { %4151 = vmatprep.subr.bf16.mxu1 %v4150_v57  ;;  %v4486_v56 = vunpack.i.h.bf16 %v4484_v6  ;;  %v4485_v32 = vunpack.i.l.bf16 %v4484_v6  ;;  %v4481_v12 = vunpack.i.h.bf16 %v6567_v50  ;;  %v4480_v58 = vunpack.i.l.bf16 %v6567_v50 }
 0x3b2   :  { %v6619_v47 = vpop.permute.xlu1 %4508  ;;  %v3556_v25 = vsel %vm222_vm2, %v3555_v1, %v4466_v20 }
 0x3b3   :  { %v2281_v43 = vsel %vm232_vm9, %v2280_v40, %v4485_v32  ;;  %v2721_v4 = vsel %vm232_vm9, %v2720_v23, %v4486_v56  ;;  %v3787_v7 = vsel %vm236_vm7, %v4476_v0, %v4481_v12  ;;  %v3363_v2 = vsel %vm236_vm7, %v4475_v45, %v4480_v58 }
 0x3b4   :  { %v4494_v11 = vpop.permute.xlu0 %4493  ;;  %v2282_v38 = vsel %vm234_vm10, %v2281_v43, %v4395_v63  ;;  %v2722_v55 = vsel %vm234_vm10, %v2721_v4, %v4396_v61  ;;  %v4451_v63 = vunpack.i.h.bf16 %v6501_v10  ;;  %v3357_v10 = vsel %vm224_vm3, %v6482_v37, %v4450_v59 }
 0x3b5   :  { %v4031_v35 = vsel %vm1988_vm13, %v2282_v38, %v4009_v15  ;;  %v4033_v31 = vsel %vm1988_vm13, %v2722_v55, %v4015_v29  ;;  %v3139_v37 = vsel %vm220_vm1, %v3138_v9, %v4445_v53  ;;  %v4495_v14 = vunpack.i.l.bf16 %v4494_v11 }
 0x3b6   :  { %v6631_v18 = vpop.permute.xlu1 %4518  ;;  %v4152_v62 = vpack.c.bf16 %v4033_v31, %v4031_v35  ;;  %v3781_v54 = vsel %vm224_vm3, %v6485_v36, %v4451_v63  ;;  %v4496_v36 = vunpack.i.h.bf16 %v4494_v11  ;;  %v3358_v46 = vsel %vm226_vm4, %v3357_v10, %v4470_v28 }
 0x3b7   :  { %v3782_v34 = vsel %vm226_vm4, %v3781_v54, %v4471_v13  ;;  %v3140_v26 = vsel %vm222_vm2, %v3139_v37, %v4465_v27  ;;  %v3359_v3 = vsel %vm228_vm5, %v3358_v46, %v4500_v52  ;;  %v4511_v56 = vunpack.i.h.bf16 %v6619_v47 }
 0x3b8   :  { %v4504_v8 = vpop.permute.xlu0 %4503  ;;  %4153 = vmatpush1.bf16.msra.mxu1 %v4152_v62  ;;  %v3783_v6 = vsel %vm228_vm5, %v3782_v34, %v4501_v30  ;;  %v3141_v33 = vsel %vm224_vm3, %v3140_v26, %v4495_v14  ;;  %v3557_v50 = vsel %vm224_vm3, %v3556_v25, %v4496_v36  ;;  %v4510_v32 = vunpack.i.l.bf16 %v6619_v47 }
 0x3b9   :  { %v4506_v39 = vunpack.i.h.bf16 %v4504_v8  ;;  %v4505_v57 = vunpack.i.l.bf16 %v4504_v8  ;;  %v4521_v43 = vunpack.i.h.bf16 %v6631_v18  ;;  %v4520_v4 = vunpack.i.l.bf16 %v6631_v18 }
 0x3ba   :  { %v6635_v21 = vpop.permute.xlu1 %4528  ;;  %v3142_v38 = vsel %vm226_vm4, %v3141_v33, %v4510_v32  ;;  %v3558_v55 = vsel %vm226_vm4, %v3557_v50, %v4511_v56 }
 0x3bb   :  { %v4531_v40 = vunpack.i.h.bf16 %v6635_v21  ;;  %v4530_v23 = vunpack.i.l.bf16 %v6635_v21  ;;  %v3364_v15 = vsel %vm238_vm8, %v3363_v2, %v4505_v57  ;;  %v3788_v29 = vsel %vm238_vm8, %v3787_v7, %v4506_v39 }
 0x3bc   :  { %v6641_v61 = vpop.permute.xlu0 %4513 }
 0x3bd   :  { %v3365_v18 = vsel %vm240_vm11, %v3364_v15, %v4530_v23  ;;  %v3789_v51 = vsel %vm240_vm11, %v3788_v29, %v4531_v40  ;;  %v4516_v24 = vunpack.i.h.bf16 %v6641_v61  ;;  %v4515_v53 = vunpack.i.l.bf16 %v6641_v61 }
 0x3be   :  { %v6643_v16 = vpop.permute.xlu1 %4538 }
 0x3bf   :  { %v4541_v17 = vunpack.i.h.bf16 %v6643_v16  ;;  %v4540_v9 = vunpack.i.l.bf16 %v6643_v16  ;;  %v3563_v12 = vsel %vm236_vm7, %v4516_v24, %v4521_v43  ;;  %v3147_v58 = vsel %vm236_vm7, %v4515_v53, %v4520_v4 }
 0x3c0   :  { %v4524_v49 = vpop.permute.xlu0 %4523 }
 0x3c1   :  { %v4526_v22 = vunpack.i.h.bf16 %v4524_v49  ;;  %v4525_v42 = vunpack.i.l.bf16 %v4524_v49  ;;  %v3148_v50 = vsel %vm238_vm8, %v3147_v58, %v4540_v9 }
 0x3c2   :  { %v6663_v60 = vpop.permute.xlu1 %4548 }
 0x3c3   :  { %v3360_v62 = vsel %vm230_vm6, %v3359_v3, %v4525_v42  ;;  %v3784_v8 = vsel %vm230_vm6, %v3783_v6, %v4526_v22  ;;  %v4551_v61 = vunpack.i.h.bf16 %v6663_v60  ;;  %v4550_v1 = vunpack.i.l.bf16 %v6663_v60 }
 0x3c4   :  { %v4534_v44 = vpop.permute.xlu0 %4533  ;;  %v3564_v22 = vsel %vm238_vm8, %v3563_v12, %v4541_v17 }
 0x3c5   :  { %v4536_v21 = vunpack.i.h.bf16 %v4534_v44  ;;  %v4535_v48 = vunpack.i.l.bf16 %v4534_v44  ;;  %v3366_v2 = vsel %vm242_vm12, %v3365_v18, %v4550_v1  ;;  %v3790_v3 = vsel %vm242_vm12, %v3789_v51, %v4551_v61 }
 0x3c6   :  { %v6677_v19 = vpop.permute.xlu1 %4558  ;;  %v4022_v40 = vrot.slane %v3366_v2, 4  ;;  %v4028_v23 = vrot.slane %v3790_v3, 4 }
 0x3c7   :  { %v3143_v49 = vsel %vm228_vm5, %v3142_v38, %v4535_v48  ;;  %v3559_v30 = vsel %vm228_vm5, %v3558_v55, %v4536_v21  ;;  %v4561_v39 = vunpack.i.h.bf16 %v6677_v19  ;;  %v4560_v57 = vunpack.i.l.bf16 %v6677_v19 }
 0x3c8   :  { %v4544_v11 = vpop.permute.xlu0 %4543 }
 0x3c9   :  { %v4546_v35 = vunpack.i.h.bf16 %v4544_v11  ;;  %v4545_v31 = vunpack.i.l.bf16 %v4544_v11  ;;  %v3149_v19 = vsel %vm240_vm11, %v3148_v50, %v4560_v57  ;;  %v3565_v43 = vsel %vm240_vm11, %v3564_v22, %v4561_v39 }
 0x3ca   :  { %v4564_v47 = vpop.permute.xlu1 %4563 }
 0x3cb   :  { %v3361_v63 = vsel %vm232_vm9, %v3360_v62, %v4545_v31  ;;  %v3785_v59 = vsel %vm232_vm9, %v3784_v8, %v4546_v35  ;;  %v4566_v52 = vunpack.i.h.bf16 %v4564_v47  ;;  %v4565_v37 = vunpack.i.l.bf16 %v4564_v47 }
 0x3cc   :  { %v4554_v13 = vpop.permute.xlu0 %4553  ;;  %v3362_v28 = vsel %vm234_vm10, %v3361_v63, %v4475_v45  ;;  %v3786_v10 = vsel %vm234_vm10, %v3785_v59, %v4476_v0 }
 0x3cd   :  { %v4556_v54 = vunpack.i.h.bf16 %v4554_v13  ;;  %v4555_v20 = vunpack.i.l.bf16 %v4554_v13  ;;  %v4021_v36 = vrot.slane %v3362_v28, 4  ;;  %v4027_v0 = vrot.slane %v3786_v10, 4 }
 0x3ce   :  { %v6703_v27 = vpop.permute.xlu1 %3943 }
 0x3cf   :  { %v3144_v16 = vsel %vm230_vm6, %v3143_v49, %v4555_v20  ;;  %v3560_v45 = vsel %vm230_vm6, %v3559_v30, %v4556_v54 }
 0x3d0   :  { %v3145_v14 = vsel %vm232_vm9, %v3144_v16, %v4565_v37  ;;  %v3561_v46 = vsel %vm232_vm9, %v3560_v45, %v4566_v52  ;;  %v1901_v34 = vpop.permute.xlu0 %1900 }
 0x3d1   :  { %v3146_v25 = vsel %vm234_vm10, %v3145_v14, %v4515_v53  ;;  %v3562_v60 = vsel %vm234_vm10, %v3561_v46, %v4516_v24  ;;  %v1951_v30 = vsel %vm218_vm0, %v6325_v41, %v1901_v34  ;;  %v3994_v41 = vsel %vm218_vm0, %v6307_v5, %v6703_v27  ;;  %v29_v27 = vld [vmem:[%s6783_s1] sm:$0xff]  ;;  %s4643_s1 = smov [#allocation5]  }
 0x3d2   :  { %v6715_v26 = vpop.permute.xlu1 %3947  ;;  %v4035_v44 = vsel %vm1988_vm13, %v3146_v25, %v4021_v36  ;;  %v4037_v7 = vsel %vm1988_vm13, %v3562_v60, %v4027_v0  ;;  %s4124_s15 = sshll.u32 %s4643_s1, 4  ;;  %s4125_s15 = int_to_ptr.vmem [resolvable:$true] %s4124_s15 }
 0x3d3   :  { %v4156_v6 = vpack.c.bf16 %v4037_v7, %v4035_v44  ;;  %v3995_v34 = vsel %vm220_vm1, %v3994_v41, %v6715_v26  ;;  %s4596_s16 = scalar_lea.vmem %s4125_s15, 512  ;;  %p4601_p9 = scmp.lt.s32.totalorder %s4125_s15, %s4125_s15 }
 0x3d4   :  { %v4569_v33 = vpop.permute.xlu0 %4568  ;;  %p4597_p8 = scmp.ne.s32.totalorder %s4125_s15, %s4596_s16  ;;  %p4602_p10 = scmp.lt.s32.totalorder %s4596_s16, %s4596_s16 }
 0x3d5   :  { %v4571_v42 = vunpack.i.h.bf16 %v4569_v33  ;;  %v4570_v56 = vunpack.i.l.bf16 %v4569_v33 }
 0x3d6   :  { %v3952_v32 = vpop.permute.xlu1 %3951  ;;  %p4603_p11 = por %p4602_p10, %p4601_p9 }
 0x3d7   :  { %v3150_v4 = vsel %vm242_vm12, %v3149_v19, %v4570_v56  ;;  %v3566_v15 = vsel %vm242_vm12, %v3565_v43, %v4571_v42  ;;  %v3996_v58 = vsel %vm222_vm2, %v3995_v34, %v3952_v32 }
 0x3d8   :  { %v1905_v29 = vpop.permute.xlu0 %1904  ;;  %v4036_v11 = vsel %vm1988_vm13, %v3150_v4, %v4022_v40  ;;  %v4038_v38 = vsel %vm1988_vm13, %v3566_v15, %v4028_v23  ;;  %p4604_p12 = pnand %p4603_p11, %p4597_p8 }
 0x3d9   :  { %v4154_v35 = vpack.c.bf16 %v4038_v38, %v4036_v11  ;;  %v1952_v37 = vsel %vm220_vm1, %v1951_v30, %v1905_v29 }
 0x3da   :  { %v3956_v55 = vpop.permute.xlu1 %3955 }
 0x3db   :  { %4155 = vmatprep.subr.bf16.mxu1 %v4154_v35  ;;  %v3997_v39 = vsel %vm224_vm3, %v3996_v58, %v3956_v55 }
 0x3dc   :  { %v1909_v31 = vpop.permute.xlu0 %1908  ;;  %4157 = vmatpush1.bf16.msra.mxu1 %v4156_v6 }
 0x3dd   :  { %v1953_v61 = vsel %vm222_vm2, %v1952_v37, %v1909_v31 }
 0x3de   :  { %v1933_v47 = vpop.permute.xlu1 %1932 }
 0x3e0   :  { %v1913_v62 = vpop.permute.xlu0 %1912 }
 0x3e1   :  { %v1954_v45 = vsel %vm224_vm3, %v1953_v61, %v1913_v62 }
 0x3e2   :  { %v3960_v8 = vpop.permute.xlu1 %3959 }
 0x3e3   :  { %v3998_v26 = vsel %vm226_vm4, %v3997_v39, %v3960_v8 }
 0x3e4   :  { %v1917_v21 = vpop.permute.xlu0 %1916 }
 0x3e5   :  { %v1955_v14 = vsel %vm226_vm4, %v1954_v45, %v1917_v21 }
 0x3e6   :  { %v3980_v48 = vpop.permute.xlu1 %3979 }
 0x3e8   :  { %v1937_v18 = vpop.permute.xlu0 %1936 }
 0x3e9   :  { %v1960_v9 = vsel %vm236_vm7, %v1933_v47, %v1937_v18 }
 0x3ea   :  { %v1941_v51 = vpop.permute.xlu1 %1940 }
 0x3eb   :  { %v1961_v28 = vsel %vm238_vm8, %v1960_v9, %v1941_v51 }
 0x3ec   :  { %v3976_v63 = vpop.permute.xlu0 %3975 }
 0x3ed   :  { %v4003_v54 = vsel %vm236_vm7, %v3976_v63, %v3980_v48 }
 0x3ee   :  { %v3984_v59 = vpop.permute.xlu1 %3983 }
 0x3ef   :  { %v4004_v1 = vsel %vm238_vm8, %v4003_v54, %v3984_v59 }
 0x3f0   :  { %v1921_v24 = vpop.permute.xlu0 %1920 }
 0x3f1   :  { %v1956_v12 = vsel %vm228_vm5, %v1955_v14, %v1921_v24 }
 0x3f2   :  { %v1945_v53 = vpop.permute.xlu1 %1944 }
 0x3f3   :  { %v1962_v20 = vsel %vm240_vm11, %v1961_v28, %v1945_v53 }
 0x3f4   :  { %v3964_v17 = vpop.permute.xlu0 %3963 }
 0x3f5   :  { %v3999_v44 = vsel %vm228_vm5, %v3998_v26, %v3964_v17 }
 0x3f6   :  { %v3988_v13 = vpop.permute.xlu1 %3987 }
 0x3f7   :  { %v4005_v36 = vsel %vm240_vm11, %v4004_v1, %v3988_v13 }
 0x3f8   :  { %v1925_v10 = vpop.permute.xlu0 %1924 }
 0x3f9   :  { %v1957_v25 = vsel %vm230_vm6, %v1956_v12, %v1925_v10 }
 0x3fa   :  { %v1949_v49 = vpop.permute.xlu1 %1948 }
 0x3fb   :  { %v1963_v52 = vsel %vm242_vm12, %v1962_v20, %v1949_v49 }
 0x3fc   :  { %4136 = vmatprep.subr.msk.mxu0 %vm1988_vm13, %v1963_v52  ;;  %v3968_v16 = vpop.permute.xlu0 %3967 }
 0x3fd   :  { %v4000_v7 = vsel %vm230_vm6, %v3999_v44, %v3968_v16 }
 0x3fe   :  { %v3992_v0 = vpop.permute.xlu1 %3991 }
 0x3ff   :  { %v4006_v46 = vsel %vm242_vm12, %v4005_v36, %v3992_v0 }
 0x400   :  { %4139 = vmatprep.subr.msk.mxu1 %vm1988_vm13, %v4006_v46  ;;  %v1929_v60 = vpop.permute.xlu0 %1928 }
 0x401   :  { %v1958_v5 = vsel %vm232_vm9, %v1957_v25, %v1929_v60 }
 0x402   :  { %v1959_v57 = vsel %vm234_vm10, %v1958_v5, %v1933_v47 }
 0x403   :  { %4137 = vmatpush1.msk.msra.mxu0 %vm1988_vm13, %v1959_v57 }
 0x404   :  { %v3972_v2 = vpop.permute.xlu0 %3971  ;;  %4138 = vmatmul.mubr.msk.f32.vlgmr.msra.gmra.mrb[0].mxu0 %vm2002_vm14, %v29_v27 }
 0x405   :  { %v4001_v3 = vsel %vm232_vm9, %v4000_v7, %v3972_v2 }
 0x406   :  { %v4002_v6 = vsel %vm234_vm10, %v4001_v3, %v3976_v63 }
 0x407   :  { %4140 = vmatpush1.msk.msra.mxu1 %vm1988_vm13, %v4002_v6 }
 0x408   :  { %4141 = vmatmul.mubr.msk.f32.vlgmr.msra.gmra.mrb[0].mxu1 %vm2002_vm14, %v29_v27 }
 0x415   :  { %v2000_v33 = vpop.permute.xlu0 %1999 }
 0x4d7   :  { %v2078_v50 = vpop.f32.mrb[0].mxu0 }
 0x4d8   :  { %v2079_v22 = vadd.f32 %v2078_v50, %v2000_v33  ;;  %v2080_v42 = vpop.f32.mrb[1].mxu0 }
 0x4d9   :  { %v2081_v56 = vadd.f32 %v2080_v42, %v2000_v33 }
 0x4da   :  { %2083 = vst [vmem:[#allocation5] sm:$0xff] %v2079_v22 }
 0x4db   :  { %2085 = vst.msk [vmem:[#allocation5 + $0x8] sm:$0xff] %vm2084_vm15, %v2081_v56  ;;  %v4111_v32 = vpop.f32.mrb[0].mxu1 }
 0x4dc   :  { %v4112_v40 = vadd.f32 %v4111_v32, %v2000_v33  ;;  %v4113_v23 = vpop.f32.mrb[1].mxu1 }
 0x4dd   :  { %v4114_v19 = vadd.f32 %v4113_v23, %v2000_v33 }
 0x4de   :  { %4117 = vst [vmem:[#allocation5 + $0x10] sm:$0xff] %v4112_v40 }
 0x4df   :  { %4118 = vst.msk [vmem:[#allocation5 + $0x18] sm:$0xff] %vm2084_vm15, %v4114_v19 }
 0x4e0   :  { %4607 = shalt.err (!%p4604_p12)
}
 0x4e1   :  { %s4608_s19 = scalar_lea.hbm %s6785_s3, 512 }
 0x4e2   :  { %p4609_p13 = scmp.ne.s32.totalorder %s6785_s3, %s4608_s19  ;;  %p4612_p0 = scmp.lt.u32.totalorder %s4608_s19, %s6785_s3 }
 0x4e4   :  { %p4614_p1 = pnand %p4612_p0, %p4609_p13 }
 0x4e6   :  { %4617 = shalt.err (!%p4614_p1)
}
 0x4e7   :  { %s4644_s24 = smov 256   ;;  %s4645_s25 = smov 16  }
 0x4e8   :  { %4130 = dma.vmem_to_hbm [thread:$0]  %s4125_s15, 512, %s6785_s3, [#allocation4], %s4644_s24, %s4644_s24, %s4645_s25  }
 0x4e9   :  { %4620 = dma.done.wait [#allocation4], 512  }
 0x4ea   :  { %4621 = vsyncadd [#allocation4], 4294966784 }
 0x4eb   :  { %4134 = vsyncpa [#allocation3], 1 }
 0x4ec   :  { %4135 = vsyncpa [#allocation4], 1 }

</bundles_post_ra>
